<compile_context>
chip_gen: v7x
topology: tpu7x:2x2x1
jax: 0.10.0
libtpu: 0.0.40
codegen_flags: <defaults>
</compile_context>

<pallas_src>
import functools

import jax
import jax.numpy as jnp
from jax.experimental import pallas as pl
from jax.experimental.pallas import tpu as pltpu

EPS = 1e-5                      # nn.BatchNorm2d default
INTER_DTYPE = jnp.bfloat16      # inter-stage activation scratch dtype
LANE = 128


# ---------------------------------------------------------------------------
# Host-side helpers (weight preparation / sizing)
# ---------------------------------------------------------------------------
def _banded_conv_weights(w_hwio, width):
    """Fold the kx taps + replicate-pad(1) along W into a banded matrix.

    w_hwio : (3, 3, Cin, Cout) HWIO conv weights.
    Returns (3*width*Cin, width*Cout) so that, with the W axis folded into the
    lane axis,   out[:, y] = sum_ky  xpadH[:, y+ky] @ B[ky]
    reproduces newPad2d(1) + conv3x3 (stride 1) exactly.
    """
    kh, kw, cin, cout = w_hwio.shape
    # source column (with replicate clamping) for each (kx, output x)
    src = jnp.clip(jnp.arange(width)[None, :] + jnp.arange(kw)[:, None] - 1,
                   0, width - 1)                                       # (kw, W)
    sel = (src[..., None] == jnp.arange(width)).astype(w_hwio.dtype)   # (kw, x, s)
    band = jnp.einsum("wxs,hwio->hsixo", sel, w_hwio)                  # (ky, s, ci, x, co)
    return band.reshape(kh * width * cin, width * cout)


def _ceil_to(v, m):
    return -(-v // m) * m


def _tile_bytes(rows, cols, itemsize):
    """VMEM bytes of a (rows, cols) tile including sublane / 128-lane padding."""
    sub = 8 * max(4 // itemsize, 1)
    return _ceil_to(max(rows, 1), sub) * _ceil_to(max(cols, 1), LANE) * itemsize


# ---------------------------------------------------------------------------
# Kernel-side helpers
# ---------------------------------------------------------------------------
def _conv3x3_folded(x_fold, wb_ref):
    """Replicate-pad(1) + 3x3 conv in the W-folded (lane-dense) layout.

    x_fold : (B, H, W*Cin) f32
    wb_ref : (3*W*Cin, W*Cout) banded conv matrix (bf16), encodes kx shifts and
             replicate padding along W.
    returns (B*H, W*Cout) f32
    """
    b, hh, wc = x_fold.shape
    # replicate pad along H only (sublane concat, stays on-chip)
    xp = jnp.concatenate([x_fold[:, :1], x_fold, x_fold[:, -1:]], axis=1)
    lhs = jnp.concatenate(
        [xp[:, ky:ky + hh, :].reshape(b * hh, wc) for ky in range(3)],
        axis=1).astype(wb_ref.dtype)                                   # (B*H, 3*W*Cin)
    return jnp.dot(lhs, wb_ref[...], preferred_element_type=jnp.float32)


def _accum_stats(v, sum_ref, sq_ref):
    """Accumulate BN sums as (8, W*C) sublane partials (VPU adds, no per-step XLU)."""
    rows, cols = v.shape
    if rows % 8 == 0:
        sum_ref[...] += jnp.sum(v.reshape(rows // 8, 8, cols), axis=0)
        sq_ref[...] += jnp.sum((v * v).reshape(rows // 8, 8, cols), axis=0)
    else:  # fallback for odd row counts
        sum_ref[0:1, :] += jnp.sum(v, axis=0, keepdims=True)
        sq_ref[0:1, :] += jnp.sum(v * v, axis=0, keepdims=True)


def _bn_scale_shift_folded(sum_ref, sq_ref, gamma_ref, beta_ref, p_ref, inv_count):
    """Finalize training-mode BatchNorm2d affine in the W-folded lane layout.

    p_ref is the (W*C, W*C) 0/1 matrix with P[i,j] = (i % C == j % C): one tiny
    MXU dot performs the per-channel reduce across W *and* the broadcast back
    to the folded layout, avoiding any lane-splitting reshape.
    """
    csum = jnp.sum(jnp.dot(sum_ref[...], p_ref[...],
                           preferred_element_type=jnp.float32),
                   axis=0, keepdims=True)                     # (1, W*C) per-channel sums
    csq = jnp.sum(jnp.dot(sq_ref[...], p_ref[...],
                          preferred_element_type=jnp.float32),
                  axis=0, keepdims=True)
    mean = csum * inv_count
    var = jnp.maximum(csq * inv_count - mean * mean, 0.0)     # clamp cancellation
    scale = gamma_ref[...] * jax.lax.rsqrt(var + EPS)         # gamma/beta arrive pre-folded
    shift = beta_ref[...] - mean * scale
    return scale, shift


def _basic_block_kernel(x_ref, wb1_ref, wb2_ref, g1_ref, b1_ref, g2_ref, b2_ref,
                        p_ref, o_ref,
                        inter, sum1, sq1, sum2, sq2, *, inv_count):
    phase = pl.program_id(0)
    ib = pl.program_id(1)
    blk_n, hh, _ = x_ref.shape

    @pl.when(jnp.logical_and(phase == 0, ib == 0))
    def _init_stats():
        for r in (sum1, sq1, sum2, sq2):
            r[...] = jnp.zeros_like(r)

    @pl.when(phase == 0)
    def _stage1():  # conv1 + BN1 partial sums
        y = _conv3x3_folded(x_ref[...].astype(jnp.float32), wb1_ref)   # (B*H, W*C) f32
        inter[ib] = y.astype(INTER_DTYPE)
        _accum_stats(y, sum1, sq1)

    @pl.when(phase == 1)
    def _stage2():  # BN1 + ReLU + conv2 + BN2 partial sums
        scale, shift = _bn_scale_shift_folded(sum1, sq1, g1_ref, b1_ref, p_ref, inv_count)
        y = jnp.maximum(inter[ib].astype(jnp.float32) * scale + shift, 0.0)
        z = _conv3x3_folded(y.reshape(blk_n, hh, -1), wb2_ref)
        inter[ib] = z.astype(INTER_DTYPE)
        _accum_stats(z, sum2, sq2)

    @pl.when(phase == 2)
    def _stage3():  # BN2 + residual + ReLU -> output block
        scale, shift = _bn_scale_shift_folded(sum2, sq2, g2_ref, b2_ref, p_ref, inv_count)
        identity = x_ref[...].astype(jnp.float32).reshape(blk_n * hh, -1)
        out = jnp.maximum(inter[ib].astype(jnp.float32) * scale + shift + identity, 0.0)
        o_ref[...] = out.reshape(o_ref.shape).astype(o_ref.dtype)


# ---------------------------------------------------------------------------
# Wrapper
# ---------------------------------------------------------------------------
def basic_block_forward(x_nhwc, params):
    """Fused BasicBlock forward (stride=1, downsample=None), NHWC layout.

    params:
      w1 : (3, 3, Cin, planes)   HWIO  (== torch conv1.weight.permute(2,3,1,0))
      w2 : (3, 3, planes, planes)
      gamma1/beta1/gamma2/beta2 : (planes,)
    """
    n, h, w, cin = x_nhwc.shape
    planes = params["w1"].shape[-1]
    if cin != planes:
        raise NotImplementedError(
            "residual add requires inplanes == planes (stride=1, downsample=None)")
    wc_in, wc_out = w * cin, w * planes
    if max(wc_in, wc_out) > 1024:
        # TODO(synk): large W*C needs a per-channel im2col path + HBM spill for inter.
        raise NotImplementedError("folded-lane kernel supports W*C <= 1024")

    f32 = jnp.float32
    wb1 = _banded_conv_weights(params["w1"].astype(f32), w).astype(jnp.bfloat16)
    wb2 = _banded_conv_weights(params["w2"].astype(f32), w).astype(jnp.bfloat16)
    # BN affine params, pre-tiled to the folded (W*C) lane layout.
    g1 = jnp.tile(params["gamma1"].reshape(1, planes).astype(f32), (1, w))
    b1 = jnp.tile(params["beta1"].reshape(1, planes).astype(f32), (1, w))
    g2 = jnp.tile(params["gamma2"].reshape(1, planes).astype(f32), (1, w))
    b2 = jnp.tile(params["beta2"].reshape(1, planes).astype(f32), (1, w))
    # Per-channel reduce / broadcast matrix for the folded layout.
    ch = jnp.arange(wc_out, dtype=jnp.int32) % planes
    pmat = (ch[:, None] == ch[None, :]).astype(f32)

    # Fold W into the lane axis: pure reshape of the same contiguous NHWC bytes.
    x_fold = x_nhwc.reshape(n, h, wc_in)

    # ---- VMEM budget (128-lane / sublane padding aware) & batch-block choice
    try:
        cap = int(pltpu.get_tpu_info().vmem_capacity_bytes)
    except Exception:
        cap = 0
    if cap <= 0:
        cap = 64 * 1024 * 1024                       # conservative: v7x per-TC VMEM
    budget = (cap * 3) // 4                          # headroom for compiler scratch

    per_img = 2 * (_tile_bytes(h, wc_in, 4) + _tile_bytes(h, wc_out, 4))  # x/out, 2 bufs
    fixed = (2 * (_tile_bytes(3 * wc_in, wc_out, 2) + _tile_bytes(3 * wc_out, wc_out, 2))
             + 2 * _tile_bytes(wc_out, wc_out, 4)
             + 8 * _tile_bytes(1, wc_out, 4)
             + _tile_bytes(n * h, wc_out, 2)         # bf16 inter-stage activation
             + 4 * _tile_bytes(8, wc_out, 4))        # BN partial sums
    bn = n                                           # images per grid step
    while bn > 1 and (n % bn or fixed + bn * per_img > budget):
        bn -= 1
    nb = n // bn
    vmem_limit = int(min(max(2 * (fixed + bn * per_img), 16 * 1024 * 1024), budget))

    kernel = functools.partial(_basic_block_kernel,
                               inv_count=1.0 / float(n * h * w))

    def _replicated(shape):
        nd = len(shape)
        return pl.BlockSpec(shape, lambda p, i, _nd=nd: (0,) * _nd)

    grid_spec = pltpu.PrefetchScalarGridSpec(
        num_scalar_prefetch=0,
        grid=(3, nb),                                # (phase, image block); phase slowest
        in_specs=[
            # phase-aware: x only needed in phase 0 (conv1) and phase 2 (residual)
            pl.BlockSpec((bn, h, wc_in), lambda p, i: (jnp.where(p == 1, 0, i), 0, 0)),
            _replicated((3 * wc_in, wc_out)),        # banded conv1 weights
            _replicated((3 * wc_out, wc_out)),       # banded conv2 weights
            _replicated((1, wc_out)), _replicated((1, wc_out)),   # gamma1 / beta1 (folded)
            _replicated((1, wc_out)), _replicated((1, wc_out)),   # gamma2 / beta2 (folded)
            _replicated((wc_out, wc_out)),           # per-channel reduce matrix
        ],
        # phase-aware: output block only advances (and writes back) in phase 2
        out_specs=pl.BlockSpec((bn, h, wc_out),
                               lambda p, i: (jnp.where(p == 2, i, 0), 0, 0)),
        scratch_shapes=[
            # TODO(synk): spill to HBM (pl.ANY + make_async_copy) when this slab
            # exceeds the VMEM budget at large N*H.
            pltpu.VMEM((nb, bn * h, wc_out), INTER_DTYPE),   # inter-stage activation
            pltpu.VMEM((8, wc_out), jnp.float32),            # BN1 sum (sublane partials)
            pltpu.VMEM((8, wc_out), jnp.float32),            # BN1 sum of squares
            pltpu.VMEM((8, wc_out), jnp.float32),            # BN2 sum
            pltpu.VMEM((8, wc_out), jnp.float32),            # BN2 sum of squares
        ])

    out_fold = pl.pallas_call(
        kernel,
        grid_spec=grid_spec,
        out_shape=jax.ShapeDtypeStruct((n, h, wc_out), x_nhwc.dtype),
        compiler_params=pltpu.CompilerParams(
            # Phases and batch-statistic accumulation are order dependent.
            dimension_semantics=("arbitrary", "arbitrary"),
            vmem_limit_bytes=vmem_limit),
    )(x_fold, wb1, wb2, g1, b1, g2, b2, pmat)

    return out_fold.reshape(n, h, w, planes)


def basic_block_forward_nchw(x_nchw, params):
    """PyTorch-layout parity wrapper (adds two layout transposes)."""
    out = basic_block_forward(jnp.transpose(x_nchw, (0, 2, 3, 1)), params)
    return jnp.transpose(out, (0, 3, 1, 2))


# ---------------------------------------------------------------------------
# Pure-JAX reference (for parity check)
# ---------------------------------------------------------------------------
def _reference_nhwc(x, params):
    def conv(v, w_):
        vp = jnp.pad(v, ((0, 0), (1, 1), (1, 1), (0, 0)), mode="edge")  # == newPad2d(1)
        return jax.lax.conv_general_dilated(
            vp, w_, window_strides=(1, 1), padding="VALID",
            dimension_numbers=("NHWC", "HWIO", "NHWC"))

    def bn(v, g, b):
        mean = jnp.mean(v, axis=(0, 1, 2), keepdims=True)
        var = jnp.mean((v - mean) ** 2, axis=(0, 1, 2), keepdims=True)
        return (v - mean) * jax.lax.rsqrt(var + EPS) * g + b

    y = jnp.maximum(bn(conv(x, params["w1"]), params["gamma1"], params["beta1"]), 0.0)
    z = bn(conv(y, params["w2"]), params["gamma2"], params["beta2"])
    return jnp.maximum(z + x, 0.0)


if __name__ == "__main__":
    N, C, H, W = 2, 8, 16, 16      # inplanes == planes; W*C = 128 (lane-dense fold)

    key = jax.random.PRNGKey(0)
    kx, kw1, kw2, kg1, kb1, kg2, kb2 = jax.random.split(key, 7)

    # NHWC activations (== PyTorch NCHW (2, 8, 16, 16) permuted channels-last).
    x = jax.random.normal(kx, (N, H, W, C), jnp.float32)
    params = {
        "w1": jax.random.normal(kw1, (3, 3, C, C), jnp.float32) * 0.1,   # HWIO
        "gamma1": 1.0 + 0.1 * jax.random.normal(kg1, (C,), jnp.float32),
        "beta1": 0.1 * jax.random.normal(kb1, (C,), jnp.float32),
        "w2": jax.random.normal(kw2, (3, 3, C, C), jnp.float32) * 0.1,
        "gamma2": 1.0 + 0.1 * jax.random.normal(kg2, (C,), jnp.float32),
        "beta2": 0.1 * jax.random.normal(kb2, (C,), jnp.float32),
    }

    out = jax.jit(basic_block_forward)(x, params)
    jax.block_until_ready(out)
    assert out.shape == (N, H, W, C), out.shape

    ref = _reference_nhwc(x, params)
    err = float(jnp.max(jnp.abs(out - ref)))
    # bf16 MXU inputs (f32 accumulation) => small expected drift vs f32 reference.
    assert err < 1e-1, f"mismatch vs reference: max abs err = {err}"
    print("KERNEL_OK")
</pallas_src>

<mosaic_0001>
module attributes {stable_mosaic.version = 11 : i64} {
  func.func @_basic_block_kernel(%arg0: i32, %arg1: i32, %arg2: memref<2x16x128xf32, #tpu.memory_space<vmem>>, %arg3: memref<384x128xbf16, #tpu.memory_space<vmem>>, %arg4: memref<384x128xbf16, #tpu.memory_space<vmem>>, %arg5: memref<1x128xf32, #tpu.memory_space<vmem>>, %arg6: memref<1x128xf32, #tpu.memory_space<vmem>>, %arg7: memref<1x128xf32, #tpu.memory_space<vmem>>, %arg8: memref<1x128xf32, #tpu.memory_space<vmem>>, %arg9: memref<128x128xf32, #tpu.memory_space<vmem>>, %arg10: memref<2x16x128xf32, #tpu.memory_space<vmem>>, %arg11: memref<1x32x128xbf16, #tpu.memory_space<vmem>>, %arg12: memref<8x128xf32, #tpu.memory_space<vmem>>, %arg13: memref<8x128xf32, #tpu.memory_space<vmem>>, %arg14: memref<8x128xf32, #tpu.memory_space<vmem>>, %arg15: memref<8x128xf32, #tpu.memory_space<vmem>>) attributes {dimension_semantics = [#tpu.dimension_semantics<arbitrary>, #tpu.dimension_semantics<arbitrary>], iteration_bounds = array<i64: 3, 1>, scalar_prefetch = 0 : i64, scratch_operands = 5 : i64, tpu.core_type = #tpu.core_type<tc>, window_params = [{transform_indices = @transform_0, window_bounds = array<i64: 2, 16, 128>}, {pipeline_mode = #tpu.pipeline_mode<synchronous>, transform_indices = @transform_1, window_bounds = array<i64: 384, 128>}, {pipeline_mode = #tpu.pipeline_mode<synchronous>, transform_indices = @transform_2, window_bounds = array<i64: 384, 128>}, {pipeline_mode = #tpu.pipeline_mode<synchronous>, transform_indices = @transform_3, window_bounds = array<i64: 1, 128>}, {pipeline_mode = #tpu.pipeline_mode<synchronous>, transform_indices = @transform_4, window_bounds = array<i64: 1, 128>}, {pipeline_mode = #tpu.pipeline_mode<synchronous>, transform_indices = @transform_5, window_bounds = array<i64: 1, 128>}, {pipeline_mode = #tpu.pipeline_mode<synchronous>, transform_indices = @transform_6, window_bounds = array<i64: 1, 128>}, {pipeline_mode = #tpu.pipeline_mode<synchronous>, transform_indices = @transform_7, window_bounds = array<i64: 128, 128>}, {transform_indices = @transform_8, window_bounds = array<i64: 2, 16, 128>}]} {
    %c0_i32 = arith.constant 0 : i32
    %0 = arith.cmpi eq, %arg0, %c0_i32 : i32
    %c0_i32_0 = arith.constant 0 : i32
    %1 = arith.cmpi eq, %arg1, %c0_i32_0 : i32
    %2 = arith.andi %0, %1 : i1
    %3 = arith.extui %2 : i1 to i32
    %c0_i32_1 = arith.constant 0 : i32
    %4 = arith.cmpi ne, %3, %c0_i32_1 : i32
    scf.if %4 {
      %cst = arith.constant 0.000000e+00 : f32
      %14 = vector.broadcast %cst : f32 to vector<8x128xf32>
      %c0 = arith.constant 0 : index
      %c0_6 = arith.constant 0 : index
      %15 = vector.load %arg12[%c0, %c0_6] : memref<8x128xf32, #tpu.memory_space<vmem>>, vector<8x128xf32>
      tpu.vector_store %arg12[%c0, %c0_6], %14 {strides = array<i32>} : memref<8x128xf32, #tpu.memory_space<vmem>>, vector<8x128xf32>,
      %cst_7 = arith.constant 0.000000e+00 : f32
      %16 = vector.broadcast %cst_7 : f32 to vector<8x128xf32>
      %c0_8 = arith.constant 0 : index
      %c0_9 = arith.constant 0 : index
      %17 = vector.load %arg13[%c0_8, %c0_9] : memref<8x128xf32, #tpu.memory_space<vmem>>, vector<8x128xf32>
      tpu.vector_store %arg13[%c0_8, %c0_9], %16 {strides = array<i32>} : memref<8x128xf32, #tpu.memory_space<vmem>>, vector<8x128xf32>,
      %cst_10 = arith.constant 0.000000e+00 : f32
      %18 = vector.broadcast %cst_10 : f32 to vector<8x128xf32>
      %c0_11 = arith.constant 0 : index
      %c0_12 = arith.constant 0 : index
      %19 = vector.load %arg14[%c0_11, %c0_12] : memref<8x128xf32, #tpu.memory_space<vmem>>, vector<8x128xf32>
      tpu.vector_store %arg14[%c0_11, %c0_12], %18 {strides = array<i32>} : memref<8x128xf32, #tpu.memory_space<vmem>>, vector<8x128xf32>,
      %cst_13 = arith.constant 0.000000e+00 : f32
      %20 = vector.broadcast %cst_13 : f32 to vector<8x128xf32>
      %c0_14 = arith.constant 0 : index
      %c0_15 = arith.constant 0 : index
      %21 = vector.load %arg15[%c0_14, %c0_15] : memref<8x128xf32, #tpu.memory_space<vmem>>, vector<8x128xf32>
      tpu.vector_store %arg15[%c0_14, %c0_15], %20 {strides = array<i32>} : memref<8x128xf32, #tpu.memory_space<vmem>>, vector<8x128xf32>,
    } else {
    }
    %c0_i32_2 = arith.constant 0 : i32
    %5 = arith.cmpi eq, %arg0, %c0_i32_2 : i32
    %6 = arith.extui %5 : i1 to i32
    %c0_i32_3 = arith.constant 0 : i32
    %7 = arith.cmpi ne, %6, %c0_i32_3 : i32
    scf.if %7 {
      %c0 = arith.constant 0 : index
      %c0_6 = arith.constant 0 : index
      %c0_7 = arith.constant 0 : index
      %14 = vector.load %arg2[%c0, %c0_6, %c0_7] : memref<2x16x128xf32, #tpu.memory_space<vmem>>, vector<2x16x128xf32>
      %15 = vector.extract_strided_slice %14 {offsets = [0, 0, 0], sizes = [2, 1, 128], strides = [1, 1, 1]} : vector<2x16x128xf32> to vector<2x1x128xf32>
      %16 = vector.extract_strided_slice %14 {offsets = [0, 15, 0], sizes = [2, 1, 128], strides = [1, 1, 1]} : vector<2x16x128xf32> to vector<2x1x128xf32>
      %17 = tpu.concatenate %15, %14, %16 in 1 : vector<2x1x128xf32>, vector<2x16x128xf32>, vector<2x1x128xf32> -> vector<2x18x128xf32>
      %18 = vector.extract_strided_slice %17 {offsets = [0, 0, 0], sizes = [2, 16, 128], strides = [1, 1, 1]} : vector<2x18x128xf32> to vector<2x16x128xf32>
      %19 = vector.shape_cast %18 : vector<2x16x128xf32> to vector<32x128xf32>
      %20 = vector.extract_strided_slice %17 {offsets = [0, 1, 0], sizes = [2, 16, 128], strides = [1, 1, 1]} : vector<2x18x128xf32> to vector<2x16x128xf32>
      %21 = vector.shape_cast %20 : vector<2x16x128xf32> to vector<32x128xf32>
      %22 = vector.extract_strided_slice %17 {offsets = [0, 2, 0], sizes = [2, 16, 128], strides = [1, 1, 1]} : vector<2x18x128xf32> to vector<2x16x128xf32>
      %23 = vector.shape_cast %22 : vector<2x16x128xf32> to vector<32x128xf32>
      %24 = tpu.concatenate %19, %21, %23 in 1 : vector<32x128xf32>, vector<32x128xf32>, vector<32x128xf32> -> vector<32x384xf32>
      %25 = arith.truncf %24 : vector<32x384xf32> to vector<32x384xbf16>
      %c0_8 = arith.constant 0 : index
      %c0_9 = arith.constant 0 : index
      %26 = vector.load %arg3[%c0_8, %c0_9] : memref<384x128xbf16, #tpu.memory_space<vmem>>, vector<384x128xbf16>
      %cst = arith.constant dense<0.000000e+00> : vector<32x128xf32>
      %27 = tpu.matmul %25, %26, %cst {dimension_numbers = #tpu.dot_dimension_numbers<[1], [0], [0], [1], [0, 0, 1, 1], [], []>} : vector<32x384xbf16>, vector<384x128xbf16>, vector<32x128xf32> -> vector<32x128xf32>
      %28 = arith.truncf %27 : vector<32x128xf32> to vector<32x128xbf16>
      %29 = arith.index_cast %arg1 : i32 to index
      %c0_10 = arith.constant 0 : index
      %c0_11 = arith.constant 0 : index
      %30 = vector.load %arg11[%29, %c0_10, %c0_11] : memref<1x32x128xbf16, #tpu.memory_space<vmem>>, vector<1x32x128xbf16>
      %31 = vector.shape_cast %30 : vector<1x32x128xbf16> to vector<32x128xbf16>
      %32 = vector.shape_cast %28 : vector<32x128xbf16> to vector<1x32x128xbf16>
      tpu.vector_store %arg11[%29, %c0_10, %c0_11], %32 {strides = array<i32>} : memref<1x32x128xbf16, #tpu.memory_space<vmem>>, vector<1x32x128xbf16>,
      %c0_12 = arith.constant 0 : index
      %c0_13 = arith.constant 0 : index
      %33 = vector.load %arg12[%c0_12, %c0_13] : memref<8x128xf32, #tpu.memory_space<vmem>>, vector<8x128xf32>
      %34 = vector.shape_cast %27 : vector<32x128xf32> to vector<4x8x128xf32>
      %cst_14 = arith.constant dense<0.000000e+00> : vector<8x128xf32>
      %35 = vector.multi_reduction <add>, %34, %cst_14 [0] : vector<4x8x128xf32> to vector<8x128xf32>
      %36 = arith.addf %33, %35 : vector<8x128xf32>
      %c0_15 = arith.constant 0 : index
      %c0_16 = arith.constant 0 : index
      %37 = vector.load %arg12[%c0_15, %c0_16] : memref<8x128xf32, #tpu.memory_space<vmem>>, vector<8x128xf32>
      tpu.vector_store %arg12[%c0_15, %c0_16], %36 {strides = array<i32>} : memref<8x128xf32, #tpu.memory_space<vmem>>, vector<8x128xf32>,
      %c0_17 = arith.constant 0 : index
      %c0_18 = arith.constant 0 : index
      %38 = vector.load %arg13[%c0_17, %c0_18] : memref<8x128xf32, #tpu.memory_space<vmem>>, vector<8x128xf32>
      %39 = arith.mulf %27, %27 : vector<32x128xf32>
      %40 = vector.shape_cast %39 : vector<32x128xf32> to vector<4x8x128xf32>
      %cst_19 = arith.constant dense<0.000000e+00> : vector<8x128xf32>
      %41 = vector.multi_reduction <add>, %40, %cst_19 [0] : vector<4x8x128xf32> to vector<8x128xf32>
      %42 = arith.addf %38, %41 : vector<8x128xf32>
      %c0_20 = arith.constant 0 : index
      %c0_21 = arith.constant 0 : index
      %43 = vector.load %arg13[%c0_20, %c0_21] : memref<8x128xf32, #tpu.memory_space<vmem>>, vector<8x128xf32>
      tpu.vector_store %arg13[%c0_20, %c0_21], %42 {strides = array<i32>} : memref<8x128xf32, #tpu.memory_space<vmem>>, vector<8x128xf32>,
    } else {
    }
    %c1_i32 = arith.constant 1 : i32
    %8 = arith.cmpi eq, %arg0, %c1_i32 : i32
    %9 = arith.extui %8 : i1 to i32
    %c0_i32_4 = arith.constant 0 : i32
    %10 = arith.cmpi ne, %9, %c0_i32_4 : i32
    scf.if %10 {
      %c0 = arith.constant 0 : index
      %c0_6 = arith.constant 0 : index
      %14 = vector.load %arg12[%c0, %c0_6] : memref<8x128xf32, #tpu.memory_space<vmem>>, vector<8x128xf32>
      %c0_7 = arith.constant 0 : index
      %c0_8 = arith.constant 0 : index
      %15 = vector.load %arg9[%c0_7, %c0_8] : memref<128x128xf32, #tpu.memory_space<vmem>>, vector<128x128xf32>
      %cst = arith.constant dense<0.000000e+00> : vector<8x128xf32>
      %16 = tpu.matmul %14, %15, %cst {dimension_numbers = #tpu.dot_dimension_numbers<[1], [0], [0], [1], [0, 0, 1, 1], [], []>} : vector<8x128xf32>, vector<128x128xf32>, vector<8x128xf32> -> vector<8x128xf32>
      %cst_9 = arith.constant dense<0.000000e+00> : vector<128xf32>
      %17 = vector.multi_reduction <add>, %16, %cst_9 [0] : vector<8x128xf32> to vector<128xf32>
      %18 = vector.shape_cast %17 : vector<128xf32> to vector<1x128xf32>
      %c0_10 = arith.constant 0 : index
      %c0_11 = arith.constant 0 : index
      %19 = vector.load %arg13[%c0_10, %c0_11] : memref<8x128xf32, #tpu.memory_space<vmem>>, vector<8x128xf32>
      %c0_12 = arith.constant 0 : index
      %c0_13 = arith.constant 0 : index
      %20 = vector.load %arg9[%c0_12, %c0_13] : memref<128x128xf32, #tpu.memory_space<vmem>>, vector<128x128xf32>
      %cst_14 = arith.constant dense<0.000000e+00> : vector<8x128xf32>
      %21 = tpu.matmul %19, %20, %cst_14 {dimension_numbers = #tpu.dot_dimension_numbers<[1], [0], [0], [1], [0, 0, 1, 1], [], []>} : vector<8x128xf32>, vector<128x128xf32>, vector<8x128xf32> -> vector<8x128xf32>
      %cst_15 = arith.constant dense<0.000000e+00> : vector<128xf32>
      %22 = vector.multi_reduction <add>, %21, %cst_15 [0] : vector<8x128xf32> to vector<128xf32>
      %23 = vector.shape_cast %22 : vector<128xf32> to vector<1x128xf32>
      %cst_16 = arith.constant 0.001953125 : f32
      %24 = vector.broadcast %cst_16 : f32 to vector<1x128xf32>
      %25 = arith.mulf %18, %24 : vector<1x128xf32>
      %cst_17 = arith.constant 0.001953125 : f32
      %26 = vector.broadcast %cst_17 : f32 to vector<1x128xf32>
      %27 = arith.mulf %23, %26 : vector<1x128xf32>
      %28 = arith.mulf %25, %25 : vector<1x128xf32>
      %29 = arith.subf %27, %28 : vector<1x128xf32>
      %cst_18 = arith.constant 0.000000e+00 : f32
      %30 = vector.broadcast %cst_18 : f32 to vector<1x128xf32>
      %31 = arith.maximumf %29, %30 : vector<1x128xf32>
      %c0_19 = arith.constant 0 : index
      %c0_20 = arith.constant 0 : index
      %32 = vector.load %arg5[%c0_19, %c0_20] : memref<1x128xf32, #tpu.memory_space<vmem>>, vector<1x128xf32>
      %cst_21 = arith.constant 9.99999974E-6 : f32
      %33 = vector.broadcast %cst_21 : f32 to vector<1x128xf32>
      %34 = arith.addf %31, %33 : vector<1x128xf32>
      %35 = math.rsqrt %34 : vector<1x128xf32>
      %36 = arith.mulf %32, %35 : vector<1x128xf32>
      %c0_22 = arith.constant 0 : index
      %c0_23 = arith.constant 0 : index
      %37 = vector.load %arg6[%c0_22, %c0_23] : memref<1x128xf32, #tpu.memory_space<vmem>>, vector<1x128xf32>
      %38 = arith.mulf %25, %36 : vector<1x128xf32>
      %39 = arith.subf %37, %38 : vector<1x128xf32>
      %40 = arith.index_cast %arg1 : i32 to index
      %c0_24 = arith.constant 0 : index
      %c0_25 = arith.constant 0 : index
      %41 = vector.load %arg11[%40, %c0_24, %c0_25] : memref<1x32x128xbf16, #tpu.memory_space<vmem>>, vector<1x32x128xbf16>
      %42 = vector.shape_cast %41 : vector<1x32x128xbf16> to vector<32x128xbf16>
      %43 = arith.extf %42 : vector<32x128xbf16> to vector<32x128xf32>
      %44 = vector.broadcast %36 : vector<1x128xf32> to vector<32x128xf32>
      %45 = arith.mulf %43, %44 : vector<32x128xf32>
      %46 = vector.broadcast %39 : vector<1x128xf32> to vector<32x128xf32>
      %47 = arith.addf %45, %46 : vector<32x128xf32>
      %cst_26 = arith.constant 0.000000e+00 : f32
      %48 = vector.broadcast %cst_26 : f32 to vector<32x128xf32>
      %49 = arith.maximumf %47, %48 : vector<32x128xf32>
      %50 = vector.shape_cast %49 : vector<32x128xf32> to vector<2x16x128xf32>
      %51 = vector.extract_strided_slice %50 {offsets = [0, 0, 0], sizes = [2, 1, 128], strides = [1, 1, 1]} : vector<2x16x128xf32> to vector<2x1x128xf32>
      %52 = vector.extract_strided_slice %50 {offsets = [0, 15, 0], sizes = [2, 1, 128], strides = [1, 1, 1]} : vector<2x16x128xf32> to vector<2x1x128xf32>
      %53 = tpu.concatenate %51, %50, %52 in 1 : vector<2x1x128xf32>, vector<2x16x128xf32>, vector<2x1x128xf32> -> vector<2x18x128xf32>
      %54 = vector.extract_strided_slice %53 {offsets = [0, 0, 0], sizes = [2, 16, 128], strides = [1, 1, 1]} : vector<2x18x128xf32> to vector<2x16x128xf32>
      %55 = vector.shape_cast %54 : vector<2x16x128xf32> to vector<32x128xf32>
      %56 = vector.extract_strided_slice %53 {offsets = [0, 1, 0], sizes = [2, 16, 128], strides = [1, 1, 1]} : vector<2x18x128xf32> to vector<2x16x128xf32>
      %57 = vector.shape_cast %56 : vector<2x16x128xf32> to vector<32x128xf32>
      %58 = vector.extract_strided_slice %53 {offsets = [0, 2, 0], sizes = [2, 16, 128], strides = [1, 1, 1]} : vector<2x18x128xf32> to vector<2x16x128xf32>
      %59 = vector.shape_cast %58 : vector<2x16x128xf32> to vector<32x128xf32>
      %60 = tpu.concatenate %55, %57, %59 in 1 : vector<32x128xf32>, vector<32x128xf32>, vector<32x128xf32> -> vector<32x384xf32>
      %61 = arith.truncf %60 : vector<32x384xf32> to vector<32x384xbf16>
      %c0_27 = arith.constant 0 : index
      %c0_28 = arith.constant 0 : index
      %62 = vector.load %arg4[%c0_27, %c0_28] : memref<384x128xbf16, #tpu.memory_space<vmem>>, vector<384x128xbf16>
      %cst_29 = arith.constant dense<0.000000e+00> : vector<32x128xf32>
      %63 = tpu.matmul %61, %62, %cst_29 {dimension_numbers = #tpu.dot_dimension_numbers<[1], [0], [0], [1], [0, 0, 1, 1], [], []>} : vector<32x384xbf16>, vector<384x128xbf16>, vector<32x128xf32> -> vector<32x128xf32>
      %64 = arith.truncf %63 : vector<32x128xf32> to vector<32x128xbf16>
      %65 = arith.index_cast %arg1 : i32 to index
      %c0_30 = arith.constant 0 : index
      %c0_31 = arith.constant 0 : index
      %66 = vector.load %arg11[%65, %c0_30, %c0_31] : memref<1x32x128xbf16, #tpu.memory_space<vmem>>, vector<1x32x128xbf16>
      %67 = vector.shape_cast %66 : vector<1x32x128xbf16> to vector<32x128xbf16>
      %68 = vector.shape_cast %64 : vector<32x128xbf16> to vector<1x32x128xbf16>
      tpu.vector_store %arg11[%65, %c0_30, %c0_31], %68 {strides = array<i32>} : memref<1x32x128xbf16, #tpu.memory_space<vmem>>, vector<1x32x128xbf16>,
      %c0_32 = arith.constant 0 : index
      %c0_33 = arith.constant 0 : index
      %69 = vector.load %arg14[%c0_32, %c0_33] : memref<8x128xf32, #tpu.memory_space<vmem>>, vector<8x128xf32>
      %70 = vector.shape_cast %63 : vector<32x128xf32> to vector<4x8x128xf32>
      %cst_34 = arith.constant dense<0.000000e+00> : vector<8x128xf32>
      %71 = vector.multi_reduction <add>, %70, %cst_34 [0] : vector<4x8x128xf32> to vector<8x128xf32>
      %72 = arith.addf %69, %71 : vector<8x128xf32>
      %c0_35 = arith.constant 0 : index
      %c0_36 = arith.constant 0 : index
      %73 = vector.load %arg14[%c0_35, %c0_36] : memref<8x128xf32, #tpu.memory_space<vmem>>, vector<8x128xf32>
      tpu.vector_store %arg14[%c0_35, %c0_36], %72 {strides = array<i32>} : memref<8x128xf32, #tpu.memory_space<vmem>>, vector<8x128xf32>,
      %c0_37 = arith.constant 0 : index
      %c0_38 = arith.constant 0 : index
      %74 = vector.load %arg15[%c0_37, %c0_38] : memref<8x128xf32, #tpu.memory_space<vmem>>, vector<8x128xf32>
      %75 = arith.mulf %63, %63 : vector<32x128xf32>
      %76 = vector.shape_cast %75 : vector<32x128xf32> to vector<4x8x128xf32>
      %cst_39 = arith.constant dense<0.000000e+00> : vector<8x128xf32>
      %77 = vector.multi_reduction <add>, %76, %cst_39 [0] : vector<4x8x128xf32> to vector<8x128xf32>
      %78 = arith.addf %74, %77 : vector<8x128xf32>
      %c0_40 = arith.constant 0 : index
      %c0_41 = arith.constant 0 : index
      %79 = vector.load %arg15[%c0_40, %c0_41] : memref<8x128xf32, #tpu.memory_space<vmem>>, vector<8x128xf32>
      tpu.vector_store %arg15[%c0_40, %c0_41], %78 {strides = array<i32>} : memref<8x128xf32, #tpu.memory_space<vmem>>, vector<8x128xf32>,
    } else {
    }
    %c2_i32 = arith.constant 2 : i32
    %11 = arith.cmpi eq, %arg0, %c2_i32 : i32
    %12 = arith.extui %11 : i1 to i32
    %c0_i32_5 = arith.constant 0 : i32
    %13 = arith.cmpi ne, %12, %c0_i32_5 : i32
    scf.if %13 {
      %c0 = arith.constant 0 : index
      %c0_6 = arith.constant 0 : index
      %14 = vector.load %arg14[%c0, %c0_6] : memref<8x128xf32, #tpu.memory_space<vmem>>, vector<8x128xf32>
      %c0_7 = arith.constant 0 : index
      %c0_8 = arith.constant 0 : index
      %15 = vector.load %arg9[%c0_7, %c0_8] : memref<128x128xf32, #tpu.memory_space<vmem>>, vector<128x128xf32>
      %cst = arith.constant dense<0.000000e+00> : vector<8x128xf32>
      %16 = tpu.matmul %14, %15, %cst {dimension_numbers = #tpu.dot_dimension_numbers<[1], [0], [0], [1], [0, 0, 1, 1], [], []>} : vector<8x128xf32>, vector<128x128xf32>, vector<8x128xf32> -> vector<8x128xf32>
      %cst_9 = arith.constant dense<0.000000e+00> : vector<128xf32>
      %17 = vector.multi_reduction <add>, %16, %cst_9 [0] : vector<8x128xf32> to vector<128xf32>
      %18 = vector.shape_cast %17 : vector<128xf32> to vector<1x128xf32>
      %c0_10 = arith.constant 0 : index
      %c0_11 = arith.constant 0 : index
      %19 = vector.load %arg15[%c0_10, %c0_11] : memref<8x128xf32, #tpu.memory_space<vmem>>, vector<8x128xf32>
      %c0_12 = arith.constant 0 : index
      %c0_13 = arith.constant 0 : index
      %20 = vector.load %arg9[%c0_12, %c0_13] : memref<128x128xf32, #tpu.memory_space<vmem>>, vector<128x128xf32>
      %cst_14 = arith.constant dense<0.000000e+00> : vector<8x128xf32>
      %21 = tpu.matmul %19, %20, %cst_14 {dimension_numbers = #tpu.dot_dimension_numbers<[1], [0], [0], [1], [0, 0, 1, 1], [], []>} : vector<8x128xf32>, vector<128x128xf32>, vector<8x128xf32> -> vector<8x128xf32>
      %cst_15 = arith.constant dense<0.000000e+00> : vector<128xf32>
      %22 = vector.multi_reduction <add>, %21, %cst_15 [0] : vector<8x128xf32> to vector<128xf32>
      %23 = vector.shape_cast %22 : vector<128xf32> to vector<1x128xf32>
      %cst_16 = arith.constant 0.001953125 : f32
      %24 = vector.broadcast %cst_16 : f32 to vector<1x128xf32>
      %25 = arith.mulf %18, %24 : vector<1x128xf32>
      %cst_17 = arith.constant 0.001953125 : f32
      %26 = vector.broadcast %cst_17 : f32 to vector<1x128xf32>
      %27 = arith.mulf %23, %26 : vector<1x128xf32>
      %28 = arith.mulf %25, %25 : vector<1x128xf32>
      %29 = arith.subf %27, %28 : vector<1x128xf32>
      %cst_18 = arith.constant 0.000000e+00 : f32
      %30 = vector.broadcast %cst_18 : f32 to vector<1x128xf32>
      %31 = arith.maximumf %29, %30 : vector<1x128xf32>
      %c0_19 = arith.constant 0 : index
      %c0_20 = arith.constant 0 : index
      %32 = vector.load %arg7[%c0_19, %c0_20] : memref<1x128xf32, #tpu.memory_space<vmem>>, vector<1x128xf32>
      %cst_21 = arith.constant 9.99999974E-6 : f32
      %33 = vector.broadcast %cst_21 : f32 to vector<1x128xf32>
      %34 = arith.addf %31, %33 : vector<1x128xf32>
      %35 = math.rsqrt %34 : vector<1x128xf32>
      %36 = arith.mulf %32, %35 : vector<1x128xf32>
      %c0_22 = arith.constant 0 : index
      %c0_23 = arith.constant 0 : index
      %37 = vector.load %arg8[%c0_22, %c0_23] : memref<1x128xf32, #tpu.memory_space<vmem>>, vector<1x128xf32>
      %38 = arith.mulf %25, %36 : vector<1x128xf32>
      %39 = arith.subf %37, %38 : vector<1x128xf32>
      %c0_24 = arith.constant 0 : index
      %c0_25 = arith.constant 0 : index
      %c0_26 = arith.constant 0 : index
      %40 = vector.load %arg2[%c0_24, %c0_25, %c0_26] : memref<2x16x128xf32, #tpu.memory_space<vmem>>, vector<2x16x128xf32>
      %41 = vector.shape_cast %40 : vector<2x16x128xf32> to vector<32x128xf32>
      %42 = arith.index_cast %arg1 : i32 to index
      %c0_27 = arith.constant 0 : index
      %c0_28 = arith.constant 0 : index
      %43 = vector.load %arg11[%42, %c0_27, %c0_28] : memref<1x32x128xbf16, #tpu.memory_space<vmem>>, vector<1x32x128xbf16>
      %44 = vector.shape_cast %43 : vector<1x32x128xbf16> to vector<32x128xbf16>
      %45 = arith.extf %44 : vector<32x128xbf16> to vector<32x128xf32>
      %46 = vector.broadcast %36 : vector<1x128xf32> to vector<32x128xf32>
      %47 = arith.mulf %45, %46 : vector<32x128xf32>
      %48 = vector.broadcast %39 : vector<1x128xf32> to vector<32x128xf32>
      %49 = arith.addf %47, %48 : vector<32x128xf32>
      %50 = arith.addf %49, %41 : vector<32x128xf32>
      %cst_29 = arith.constant 0.000000e+00 : f32
      %51 = vector.broadcast %cst_29 : f32 to vector<32x128xf32>
      %52 = arith.maximumf %50, %51 : vector<32x128xf32>
      %53 = vector.shape_cast %52 : vector<32x128xf32> to vector<2x16x128xf32>
      %c0_30 = arith.constant 0 : index
      %c0_31 = arith.constant 0 : index
      %c0_32 = arith.constant 0 : index
      %54 = vector.load %arg10[%c0_30, %c0_31, %c0_32] : memref<2x16x128xf32, #tpu.memory_space<vmem>>, vector<2x16x128xf32>
      tpu.vector_store %arg10[%c0_30, %c0_31, %c0_32], %53 {strides = array<i32>} : memref<2x16x128xf32, #tpu.memory_space<vmem>>, vector<2x16x128xf32>,
    } else {
    }
    return
  }
  func.func @transform_0(%arg0: i32, %arg1: i32) -> (i32, i32, i32) {
    %c1_i32 = arith.constant 1 : i32
    %0 = arith.cmpi eq, %arg0, %c1_i32 : i32
    %c0_i32 = arith.constant 0 : i32
    %1 = arith.select %0, %c0_i32, %arg1 : i32
    %c0_i32_0 = arith.constant 0 : i32
    %c0_i32_1 = arith.constant 0 : i32
    %c0_i32_2 = arith.constant 0 : i32
    return %1, %c0_i32_0, %c0_i32_1 : i32, i32, i32
  }
  func.func @transform_1(%arg0: i32, %arg1: i32) -> (i32, i32) {
    %c0_i32 = arith.constant 0 : i32
    %c0_i32_0 = arith.constant 0 : i32
    %c0_i32_1 = arith.constant 0 : i32
    return %c0_i32, %c0_i32_0 : i32, i32
  }
  func.func @transform_2(%arg0: i32, %arg1: i32) -> (i32, i32) {
    %c0_i32 = arith.constant 0 : i32
    %c0_i32_0 = arith.constant 0 : i32
    %c0_i32_1 = arith.constant 0 : i32
    return %c0_i32, %c0_i32_0 : i32, i32
  }
  func.func @transform_3(%arg0: i32, %arg1: i32) -> (i32, i32) {
    %c0_i32 = arith.constant 0 : i32
    %c0_i32_0 = arith.constant 0 : i32
    %c0_i32_1 = arith.constant 0 : i32
    return %c0_i32, %c0_i32_0 : i32, i32
  }
  func.func @transform_4(%arg0: i32, %arg1: i32) -> (i32, i32) {
    %c0_i32 = arith.constant 0 : i32
    %c0_i32_0 = arith.constant 0 : i32
    %c0_i32_1 = arith.constant 0 : i32
    return %c0_i32, %c0_i32_0 : i32, i32
  }
  func.func @transform_5(%arg0: i32, %arg1: i32) -> (i32, i32) {
    %c0_i32 = arith.constant 0 : i32
    %c0_i32_0 = arith.constant 0 : i32
    %c0_i32_1 = arith.constant 0 : i32
    return %c0_i32, %c0_i32_0 : i32, i32
  }
  func.func @transform_6(%arg0: i32, %arg1: i32) -> (i32, i32) {
    %c0_i32 = arith.constant 0 : i32
    %c0_i32_0 = arith.constant 0 : i32
    %c0_i32_1 = arith.constant 0 : i32
    return %c0_i32, %c0_i32_0 : i32, i32
  }
  func.func @transform_7(%arg0: i32, %arg1: i32) -> (i32, i32) {
    %c0_i32 = arith.constant 0 : i32
    %c0_i32_0 = arith.constant 0 : i32
    %c0_i32_1 = arith.constant 0 : i32
    return %c0_i32, %c0_i32_0 : i32, i32
  }
  func.func @transform_8(%arg0: i32, %arg1: i32) -> (i32, i32, i32) {
    %c2_i32 = arith.constant 2 : i32
    %0 = arith.cmpi eq, %arg0, %c2_i32 : i32
    %c0_i32 = arith.constant 0 : i32
    %1 = arith.select %0, %arg1, %c0_i32 : i32
    %c0_i32_0 = arith.constant 0 : i32
    %c0_i32_1 = arith.constant 0 : i32
    %c0_i32_2 = arith.constant 0 : i32
    return %1, %c0_i32_0, %c0_i32_1 : i32, i32, i32
  }
}

</mosaic_0001>

<bundles_post_ra>
// kernel: basic_block_forward.1
= control target key start
LH: loop header
LB: loop body
LE: loop exit
PB: predicated region body
PF: predicated region fallthrough
CT: control target
= control target key end

     0   :  { %s2292_s27 = smov 0   ;;  %s2294_s28 = smov 0   ;;  %s2641_s0 = inlined_call_operand.vmem [shape: f32[2,16,128], index: 0, kind: input, shape index: {}]   ;;  %s2642_s1 = inlined_call_operand.vmem [shape: bf16[384,128], index: 1, kind: input, shape index: {}]   ;;  %s2643_s2 = inlined_call_operand.vmem [shape: bf16[384,128], index: 2, kind: input, shape index: {}]   ;;  %s2644_s3 = inlined_call_operand.vmem [shape: f32[1,128], index: 3, kind: input, shape index: {}]   ;;  %s2645_s4 = inlined_call_operand.vmem [shape: f32[1,128], index: 4, kind: input, shape index: {}]   ;;  %s2646_s5 = inlined_call_operand.vmem [shape: f32[1,128], index: 5, kind: input, shape index: {}]   ;;  %s2647_s6 = inlined_call_operand.vmem [shape: f32[1,128], index: 6, kind: input, shape index: {}]   ;;  %s2648_s7 = inlined_call_operand.vmem [shape: f32[128,128], index: 7, kind: input, shape index: {}]   ;;  %s2649_s8 = inlined_call_operand.vmem [shape: f32[2,16,128], index: 8, kind: output, shape index: {}]  }
   0x1   :  { %s2296_s29 = smov 0  }
   0x2 LB: > { %s30_s30 = sadd.s32 1, %s2234_s28  ;;  %p1655_p0 = scmp.ge.s32.totalorder %s2238_s29, 1  ;;  %s2238_s29 = sphi %s2296_s29, %s18_s29   ;;  %s2234_s28 = sphi %s2294_s28, %s2651_s28   ;;  %s2230_s27 = sphi %s2292_s27, %s2650_s27  }
   0x3   : > { %p32_p1 = scmp.ge.s32.totalorder %s30_s30, 3  ;;  %p288_p2 = scmp.lt.s32.totalorder %s2238_s29, 4 }
   0x5   : > { %s2653_s30 = smov (%p32_p1, %s30_s30), 0  ;;  %p289_p3 = pnand %p1655_p0, %p288_p2 }
   0x6   : > { %p351_p4 = scmp.eq.s32.totalorder (!%p289_p3), %s2230_s27, 0 }
   0x7   : > { %292 = sbr.rel (%p289_p3) target bundleno = 1120 (0x460), region = 52 }
   0xe   : > { %356 = sbr.rel (!%p351_p4) target bundleno = 21 (0x15), region = 56  ;;  %v2240_v0 = vmov (%p351_p4), 0.0  }
   0xf   : > { %357 = vst [vmem:[#allocation3] sm:$0xff] (%p351_p4), %v2240_v0  ;;  %358 = vst [vmem:[#allocation4] sm:$0xff] (%p351_p4), %v2240_v0 }
  0x10   : > { %359 = vst [vmem:[#allocation5] sm:$0xff] (%p351_p4), %v2240_v0  ;;  %360 = vst [vmem:[#allocation6] sm:$0xff] (%p351_p4), %v2240_v0 }
  0x15 PF: > { %p1657_p5 = scmp.ne.s32.totalorder %s2230_s27, 0 }
  0x16   : > { %v2164_v1 = vld [vmem:[%s2642_s1 + $0x40] sm:$0xff] (!%p1657_p5)   ;;  %v2167_v4 = vld [vmem:[%s2642_s1 + $0x48] sm:$0xff] (!%p1657_p5)   ;;  %v2170_v7 = vld [vmem:[%s2642_s1 + $0x50] sm:$0xff] (!%p1657_p5)   ;;  %vm372_vm0 = vcmask (!%p1657_p5), 1040384   ;;  %vm397_vm1 = vcmask (!%p1657_p5), 1046528   ;;  %vm412_vm2 = vcmask (!%p1657_p5), 1045504  }
  0x17   : > { %363 = sbr.rel (%p1657_p5) target bundleno = 289 (0x121), region = 60  ;;  %v2165_v2 = vld [vmem:[%s2642_s1] sm:$0xff] (!%p1657_p5)   ;;  %1713 = vmatprep.subr.bf16.mxu0 (!%p1657_p5), %v2164_v1  ;;  %v2168_v5 = vld [vmem:[%s2642_s1 + $0x8] sm:$0xff] (!%p1657_p5)   ;;  %v2171_v8 = vld [vmem:[%s2642_s1 + $0x10] sm:$0xff] (!%p1657_p5)  }
  0x18   : > { %v2166_v3 = vld [vmem:[%s2642_s1 + $0x80] sm:$0xff] (!%p1657_p5)   ;;  %1714 = vmatpush3.bf16.msra.mxu0 (!%p1657_p5), %v2165_v2  ;;  %v2169_v6 = vld [vmem:[%s2642_s1 + $0x88] sm:$0xff] (!%p1657_p5)   ;;  %v2172_v9 = vld [vmem:[%s2642_s1 + $0x90] sm:$0xff] (!%p1657_p5)  }
  0x19   : > { %1857 = vmatprep.subr.bf16.mxu1 (!%p1657_p5), %v2166_v3  ;;  %1715 = vmatprep.subr.bf16.mxu0 (!%p1657_p5), %v2167_v4  ;;  %v2173_v10 = vld [vmem:[%s2642_s1 + $0x58] sm:$0xff] (!%p1657_p5)   ;;  %v2176_v13 = vld [vmem:[%s2642_s1 + $0x60] sm:$0xff] (!%p1657_p5)   ;;  %v2179_v16 = vld [vmem:[%s2642_s1 + $0x68] sm:$0xff] (!%p1657_p5)  }
  0x1a   : > { %1858 = vmatpush3.bf16.msra.mxu1 (!%p1657_p5), %v2166_v3  ;;  %v2174_v11 = vld [vmem:[%s2642_s1 + $0x18] sm:$0xff] (!%p1657_p5)   ;;  %v2178_v14 = vld [vmem:[%s2642_s1 + $0xa0] sm:$0xff] (!%p1657_p5)   ;;  %v2181_v17 = vld [vmem:[%s2642_s1 + $0xa8] sm:$0xff] (!%p1657_p5)  }
  0x1b   : > { %1859 = vmatprep.subr.bf16.mxu1 (!%p1657_p5), %v2169_v6  ;;  %v2175_v12 = vld [vmem:[%s2642_s1 + $0x98] sm:$0xff] (!%p1657_p5)   ;;  %v2177_v15 = vld [vmem:[%s2642_s1 + $0x20] sm:$0xff] (!%p1657_p5)   ;;  %v2180_v18 = vld [vmem:[%s2642_s1 + $0x28] sm:$0xff] (!%p1657_p5)  }
  0x1c   : > { %1716 = vmatpush3.bf16.msra.mxu0 (!%p1657_p5), %v2168_v5  ;;  %v2182_v19 = vld [vmem:[%s2642_s1 + $0x70] sm:$0xff] (!%p1657_p5)   ;;  %v2185_v22 = vld [vmem:[%s2642_s1 + $0x78] sm:$0xff] (!%p1657_p5)   ;;  %v364_v23 = vld [vmem:[%s2641_s0] sm:$0xff] (!%p1657_p5) }
  0x1d   : > { %1717 = vmatprep.subr.bf16.mxu0 (!%p1657_p5), %v2170_v7  ;;  %v2183_v20 = vld [vmem:[%s2642_s1 + $0x30] sm:$0xff] (!%p1657_p5)   ;;  %v365_v24 = vld [vmem:[%s2641_s0 + $0x8] sm:$0xff] (!%p1657_p5)  ;;  %v373_v26 = vrot.slane (!%p1657_p5), %v364_v23, 7  ;;  %v367_v29 = vld [vmem:[%s2641_s0 + $0x18] sm:$0xff] (!%p1657_p5) }
  0x1e   : > { %1860 = vmatpush3.bf16.msra.mxu1 %v2169_v6  ;;  %v2184_v21 = vld [vmem:[%s2642_s1 + $0xb0] sm:$0xff]   ;;  %v374_v27 = vrot.slane %v365_v24, 7  ;;  %v385_v28 = vrot.slane %v365_v24, 6  ;;  %v2187_v31 = vld [vmem:[%s2642_s1 + $0xb8] sm:$0xff]   ;;  %v377_v32 = vrot.slane %v367_v29, 7  ;;  %v386_v33 = vrot.slane %v367_v29, 6 }
  0x1f   : > { %1861 = vmatprep.subr.bf16.mxu1 %v2172_v9  ;;  %v366_v25 = vld [vmem:[%s2641_s0 + $0x10] sm:$0xff]  ;;  %v2186_v34 = vld [vmem:[%s2642_s1 + $0x38] sm:$0xff]   ;;  %v389_v36 = vsel %vm372_vm0, %v364_v23, %v373_v26 }
  0x20   : > { %1718 = vmatpush3.bf16.msra.mxu0 %v2171_v8  ;;  %v376_v30 = vrot.slane %v366_v25, 7  ;;  %v375_v35 = vsel %vm372_vm0, %v373_v26, %v374_v27  ;;  %v391_v37 = vsel %vm372_vm0, %v374_v27, %v385_v28  ;;  %v398_v39 = vrot.slane %v389_v36, 1 }
  0x21   : > { %1719 = vmatprep.subr.bf16.mxu0 %v2173_v10  ;;  %v399_v40 = vrot.slane %v375_v35, 1  ;;  %v401_v41 = vrot.slane %v391_v37, 1  ;;  %v427_v42 = vpack.c.bf16 %v375_v35, %v389_v36  ;;  %v413_v43 = vrot.slane %v389_v36, 2 }
  0x22   : > { %1862 = vmatpush3.bf16.msra.mxu1 %v2172_v9  ;;  %v390_v38 = vsel %vm372_vm0, %v366_v25, %v376_v30  ;;  %v414_v44 = vrot.slane %v375_v35, 2  ;;  %v416_v45 = vrot.slane %v391_v37, 2  ;;  %v378_v46 = vsel %vm372_vm0, %v376_v30, %v377_v32  ;;  %v730_v30 = vld [vmem:[#allocation3] sm:$0xff]  ;;  %v736_v35 = vld [vmem:[#allocation4] sm:$0xff] }
  0x23   : > { %1863 = vmatprep.subr.bf16.mxu1 %v2175_v12  ;;  %v400_v47 = vsel %vm397_vm1, %v398_v39, %v399_v40  ;;  %v402_v48 = vsel %vm397_vm1, %v399_v40, %v401_v41  ;;  %v392_v49 = vsel %vm372_vm0, %v377_v32, %v386_v33  ;;  %v418_v50 = vrot.slane %v390_v38, 2 }
  0x24   : > { %1720 = vmatpush3.bf16.msra.mxu0 %v2174_v11  ;;  %v428_v51 = vpack.c.bf16 %v402_v48, %v400_v47  ;;  %v415_v52 = vsel %vm412_vm2, %v413_v43, %v414_v44  ;;  %v417_v53 = vsel %vm412_vm2, %v414_v44, %v416_v45  ;;  %v419_v54 = vrot.slane %v378_v46, 2 }
  0x25   : > { %1721 = vmatprep.subr.bf16.mxu0 %v2176_v13  ;;  %v429_v55 = vpack.c.bf16 %v417_v53, %v415_v52  ;;  %v421_v56 = vrot.slane %v392_v49, 2  ;;  %v403_v57 = vrot.slane %v390_v38, 1  ;;  %v404_v58 = vrot.slane %v378_v46, 1 }
  0x26   : > { %1864 = vmatpush3.bf16.msra.mxu1 %v2175_v12  ;;  %657 = vmatprep.mubr.bf16.mxu0 %v428_v51  ;;  %v420_v59 = vsel %vm412_vm2, %v418_v50, %v419_v54  ;;  %v406_v60 = vrot.slane %v392_v49, 1  ;;  %v430_v2 = vpack.c.bf16 %v378_v46, %v390_v38 }
  0x27   : > { %1865 = vmatprep.subr.bf16.mxu1 %v2178_v14  ;;  %1873 = vmatprep.mubr.bf16.mxu1 %v429_v55  ;;  %v422_v61 = vsel %vm412_vm2, %v419_v54, %v421_v56  ;;  %v405_v62 = vsel %vm397_vm1, %v403_v57, %v404_v58 }
  0x28   : > { %1722 = vmatpush3.bf16.msra.mxu0 %v2177_v15  ;;  %v432_v63 = vpack.c.bf16 %v422_v61, %v420_v59  ;;  %v407_v0 = vsel %vm397_vm1, %v404_v58, %v406_v60 }
  0x29   : > { %1723 = vmatprep.subr.bf16.mxu0 %v2179_v16  ;;  %v431_v1 = vpack.c.bf16 %v407_v0, %v405_v62 }
  0x2a   : > { %1866 = vmatpush3.bf16.msra.mxu1 %v2178_v14 }
  0x2b   : > { %1867 = vmatprep.subr.bf16.mxu1 %v2181_v17 }
  0x2c   : > { %1724 = vmatpush3.bf16.msra.mxu0 %v2180_v18 }
  0x2d   : > { %1725 = vmatprep.subr.bf16.mxu0 %v2182_v19 }
  0x2e   : > { %1868 = vmatpush3.bf16.msra.mxu1 %v2181_v17 }
  0x2f   : > { %1869 = vmatprep.subr.bf16.mxu1 %v2184_v21 }
  0x30   : > { %1726 = vmatpush3.bf16.msra.mxu0 %v2183_v20 }
  0x31   : > { %1727 = vmatprep.subr.bf16.mxu0 %v2185_v22 }
  0x32   : > { %1870 = vmatpush3.bf16.msra.mxu1 %v2184_v21 }
  0x33   : > { %1871 = vmatprep.subr.bf16.mxu1 %v2187_v31 }
  0x34   : > { %1728 = vmatpush3.bf16.msra.mxu0 %v2186_v34 }
  0x36   : > { %1872 = vmatpush3.bf16.msra.mxu1 %v2187_v31 }
  0x37   : > { %658 = vmatmul.mubr.bf16.vlgmr.msra.gmra.mrb[0].mxu0 %v427_v42 }
  0x38   : > { %665 = vmatprep.mubr.bf16.mxu0 %v431_v1 }
  0x39   : > { %1874 = vmatmul.mubr.bf16.vlgmr.msra.gmra.mrb[0].mxu1 %v432_v63 }
  0x3f   : > { %666 = vmatmul.mubr.bf16.gmra.mrb[4].mxu0 %v430_v2 }
 0x10a   : > { %v1729_v3 = vpop.f32.mrb[0].mxu0 }
 0x10b   : > { %v1730_v4 = vpop.f32.mrb[1].mxu0 }
 0x10c   : > { %v1731_v5 = vadd.f32 %v1730_v4, %v1729_v3  ;;  %v1732_v6 = vpop.f32.mrb[2].mxu0  ;;  %v1875_v7 = vpop.f32.mrb[0].mxu1 }
 0x10d   : > { %v1733_v8 = vpop.f32.mrb[3].mxu0  ;;  %v708_v10 = vpop.f32.mrb[1].mxu1 }
 0x10e   : > { %v1734_v9 = vadd.f32 %v1733_v8, %v1732_v6  ;;  %v709_v11 = vadd.f32 %v1731_v5, %v708_v10  ;;  %v1876_v12 = vpop.f32.mrb[2].mxu1 }
 0x10f   : > { %v711_v13 = vpop.f32.mrb[3].mxu1 }
 0x110   : > { %v712_v14 = vadd.f32 %v1734_v9, %v711_v13  ;;  %v737_v16 = vmul.f32 %v709_v11, %v709_v11 }
 0x112   : > { %v1735_v15 = vpop.f32.mrb[4].mxu0  ;;  %v723_v17 = vpack.c.bf16 %v712_v14, %v709_v11  ;;  %v731_v18 = vadd.f32 %v712_v14, %v709_v11  ;;  %v738_v19 = vmul.f32 %v712_v14, %v712_v14 }
 0x113   : > { %v1736_v20 = vpop.f32.mrb[5].mxu0 }
 0x114   : > { %v1737_v21 = vadd.f32 %v1736_v20, %v1735_v15  ;;  %v1738_v22 = vpop.f32.mrb[6].mxu0  ;;  %728 = vst [vmem:[#allocation2] sm:$0xff] %v723_v17  ;;  %v741_v23 = vadd.f32 %v738_v19, %v737_v16 }
 0x115   : > { %v1739_v24 = vpop.f32.mrb[7].mxu0 }
 0x116   : > { %v717_v25 = vadd.f32 %v1875_v7, %v1737_v21  ;;  %v1740_v26 = vadd.f32 %v1739_v24, %v1738_v22 }
 0x118   : > { %v732_v27 = vadd.f32 %v731_v18, %v717_v25  ;;  %v739_v28 = vmul.f32 %v717_v25, %v717_v25  ;;  %v720_v29 = vadd.f32 %v1876_v12, %v1740_v26 }
 0x11a   : > { %v742_v31 = vadd.f32 %v741_v23, %v739_v28  ;;  %v724_v32 = vpack.c.bf16 %v720_v29, %v717_v25  ;;  %v733_v33 = vadd.f32 %v732_v27, %v720_v29  ;;  %v740_v34 = vmul.f32 %v720_v29, %v720_v29 }
 0x11c   : > { %729 = vst [vmem:[#allocation2 + $0x8] sm:$0xff] %v724_v32  ;;  %v734_v36 = vadd.f32 %v733_v33, %v730_v30  ;;  %v743_v37 = vadd.f32 %v742_v31, %v740_v34 }
 0x11e   : > { %735 = vst [vmem:[#allocation3] sm:$0xff] %v734_v36  ;;  %v744_v38 = vadd.f32 %v743_v37, %v736_v35 }
 0x120   : > { %745 = vst [vmem:[#allocation4] sm:$0xff] %v744_v38 }
 0x121 PF: > { %p1682_p6 = scmp.ne.s32.totalorder %s2230_s27, 1 }
 0x122   : > { %v751_v39 = vld [vmem:[%s2648_s7] sm:$0xff] (!%p1682_p6)  ;;  %v752_v40 = vld [vmem:[%s2648_s7 + $0x8] sm:$0xff] (!%p1682_p6)  ;;  %v753_v41 = vld [vmem:[%s2648_s7 + $0x10] sm:$0xff] (!%p1682_p6)  ;;  %v2241_v42 = vmov (!%p1682_p6), 0.0|0.0   ;;  %vm2242_vm3 = vmmov (!%p1682_p6), 0   ;;  %v2243_v45 = vmov (!%p1682_p6), 0.0  }
 0x123   : > { %749 = sbr.rel (%p1682_p6) target bundleno = 824 (0x338), region = 64  ;;  %2037 = vmatprep.subr.bf16.mxu0 (!%p1682_p6), %v2241_v42  ;;  %2061 = vmatprep.subr.bf16.mxu1 (!%p1682_p6), %v2241_v42  ;;  %v2038_v43 = vpack.c.bf16 (!%p1682_p6), %v752_v40, %v751_v39  ;;  %v754_v44 = vld [vmem:[%s2648_s7 + $0x18] sm:$0xff] (!%p1682_p6)  ;;  %v755_v47 = vld [vmem:[%s2648_s7 + $0x20] sm:$0xff] (!%p1682_p6)  ;;  %v756_v48 = vld [vmem:[%s2648_s7 + $0x28] sm:$0xff] (!%p1682_p6)  ;;  %vm969_vm4 = vcmask (!%p1682_p6), 1040384   ;;  %vm994_vm5 = vcmask (!%p1682_p6), 1046528  }
 0x124   : > { %1909 = vmatprep.mubr.msk.f32.mxu0 (!%p1682_p6), %vm2242_vm3, %v2243_v45  ;;  %1944 = vmatprep.mubr.msk.f32.mxu1 (!%p1682_p6), %vm2242_vm3, %v2243_v45  ;;  %v2041_v46 = vpack.c.bf16 (!%p1682_p6), %v754_v44, %v753_v41  ;;  %v757_v49 = vld [vmem:[%s2648_s7 + $0x30] sm:$0xff] (!%p1682_p6)  ;;  %v758_v50 = vld [vmem:[%s2648_s7 + $0x38] sm:$0xff] (!%p1682_p6)  ;;  %v2044_v51 = vpack.c.bf16 (!%p1682_p6), %v756_v48, %v755_v47  ;;  %v759_v52 = vld [vmem:[%s2648_s7 + $0x40] sm:$0xff] (!%p1682_p6)  ;;  %vm1009_vm6 = vcmask (!%p1682_p6), 1045504  }
 0x125   : > { %2039 = vmatpush3.bf16.msra.mxu0 (!%p1682_p6), %v2038_v43  ;;  %2063 = vmatpush3.bf16.msra.mxu1 (!%p1682_p6), %v2038_v43  ;;  %v760_v53 = vld [vmem:[%s2648_s7 + $0x48] sm:$0xff] (!%p1682_p6)  ;;  %v2047_v54 = vpack.c.bf16 (!%p1682_p6), %v758_v50, %v757_v49  ;;  %v761_v55 = vld [vmem:[%s2648_s7 + $0x50] sm:$0xff] (!%p1682_p6)  ;;  %v762_v56 = vld [vmem:[%s2648_s7 + $0x58] sm:$0xff] (!%p1682_p6)  ;;  %v942_v49 = vlaneseq (!%p1682_p6) }
 0x126   : > { %2040 = vmatprep.subr.bf16.mxu0 (!%p1682_p6), %v2241_v42  ;;  %2064 = vmatprep.subr.bf16.mxu1 (!%p1682_p6), %v2241_v42  ;;  %v2050_v57 = vpack.c.bf16 (!%p1682_p6), %v760_v53, %v759_v52  ;;  %v763_v58 = vld [vmem:[%s2648_s7 + $0x60] sm:$0xff] (!%p1682_p6)  ;;  %v764_v59 = vld [vmem:[%s2648_s7 + $0x68] sm:$0xff] (!%p1682_p6)  ;;  %v2053_v60 = vpack.c.bf16 (!%p1682_p6), %v762_v56, %v761_v55  ;;  %v765_v62 = vld [vmem:[%s2648_s7 + $0x70] sm:$0xff] (!%p1682_p6) }
 0x127   : > { %v2056_v61 = vpack.c.bf16 (!%p1682_p6), %v764_v59, %v763_v58  ;;  %v766_v63 = vld [vmem:[%s2648_s7 + $0x78] sm:$0xff] (!%p1682_p6)  ;;  %v750_v1 = vld [vmem:[#allocation3] sm:$0xff] (!%p1682_p6)  ;;  %v2188_v3 = vld [vmem:[%s2643_s2 + $0x40] sm:$0xff] (!%p1682_p6)   ;;  %v943_v50 = vshrl.u32 (!%p1682_p6), %v942_v49, 7 }
 0x128   : > { %v2059_v0 = vpack.c.bf16 (!%p1682_p6), %v766_v63, %v765_v62  ;;  %v843_v2 = vld [vmem:[#allocation4] sm:$0xff] (!%p1682_p6)  ;;  %v2189_v4 = vld [vmem:[%s2643_s2 + $0x80] sm:$0xff] (!%p1682_p6)   ;;  %v2191_v6 = vld [vmem:[%s2643_s2 + $0x48] sm:$0xff] (!%p1682_p6)  }
 0x129   : > { %2042 = vmatpush3.bf16.msra.mxu0 (!%p1682_p6), %v2041_v46  ;;  %2066 = vmatpush3.bf16.msra.mxu1 (!%p1682_p6), %v2041_v46  ;;  %v2190_v5 = vld [vmem:[%s2643_s2] sm:$0xff] (!%p1682_p6)   ;;  %v2192_v7 = vld [vmem:[%s2643_s2 + $0x88] sm:$0xff] (!%p1682_p6)   ;;  %v2194_v9 = vld [vmem:[%s2643_s2 + $0x50] sm:$0xff] (!%p1682_p6)   ;;  %v944_v52 = vsub.s32 (!%p1682_p6), 0, %v943_v50 }
 0x12a   : > { %2043 = vmatprep.subr.bf16.mxu0 %v2241_v42  ;;  %2067 = vmatprep.subr.bf16.mxu1 %v2241_v42  ;;  %v2193_v8 = vld [vmem:[%s2643_s2 + $0x8] sm:$0xff]   ;;  %v2195_v10 = vld [vmem:[%s2643_s2 + $0x90] sm:$0xff]   ;;  %v2197_v12 = vld [vmem:[%s2643_s2 + $0x58] sm:$0xff]  }
 0x12b   : > { %v2196_v11 = vld [vmem:[%s2643_s2 + $0x10] sm:$0xff]   ;;  %v2198_v13 = vld [vmem:[%s2643_s2 + $0x98] sm:$0xff]   ;;  %v2200_v15 = vld [vmem:[%s2643_s2 + $0x60] sm:$0xff]  }
 0x12c   : > { %v2199_v14 = vld [vmem:[%s2643_s2 + $0x18] sm:$0xff]   ;;  %v2201_v16 = vld [vmem:[%s2643_s2 + $0xa0] sm:$0xff]   ;;  %v2203_v18 = vld [vmem:[%s2643_s2 + $0x68] sm:$0xff]  }
 0x12d   : > { %2045 = vmatpush3.bf16.msra.mxu0 %v2044_v51  ;;  %2069 = vmatpush3.bf16.msra.mxu1 %v2044_v51  ;;  %v2202_v17 = vld [vmem:[%s2643_s2 + $0x20] sm:$0xff]   ;;  %v2204_v19 = vld [vmem:[%s2643_s2 + $0xa8] sm:$0xff]   ;;  %v2206_v21 = vld [vmem:[%s2643_s2 + $0x70] sm:$0xff]  }
 0x12e   : > { %2046 = vmatprep.subr.bf16.mxu0 %v2241_v42  ;;  %2070 = vmatprep.subr.bf16.mxu1 %v2241_v42  ;;  %v2205_v20 = vld [vmem:[%s2643_s2 + $0x28] sm:$0xff]   ;;  %v2207_v22 = vld [vmem:[%s2643_s2 + $0xb0] sm:$0xff]   ;;  %v2209_v24 = vld [vmem:[%s2643_s2 + $0x78] sm:$0xff]  }
 0x12f   : > { %v2208_v23 = vld [vmem:[%s2643_s2 + $0x30] sm:$0xff]   ;;  %v2210_v25 = vld [vmem:[%s2643_s2 + $0xb8] sm:$0xff]   ;;  %v925_v51 = vld [vmem:[%s2644_s3] sm:$0x1] }
 0x130   : > { %v2211_v26 = vld [vmem:[%s2643_s2 + $0x38] sm:$0xff]   ;;  %v935_v53 = vld [vmem:[#allocation2] sm:$0xff]  ;;  %v936_v55 = vld [vmem:[#allocation2 + $0x8] sm:$0xff] }
 0x131   : > { %2048 = vmatpush3.bf16.msra.mxu0 %v2047_v54  ;;  %2072 = vmatpush3.bf16.msra.mxu1 %v2047_v54  ;;  %v937_v58 = vunpack.c.l.bf16 %v935_v53  ;;  %v938_v59 = vunpack.c.h.bf16 %v935_v53  ;;  %v939_v62 = vunpack.c.l.bf16 %v936_v55  ;;  %v940_v63 = vunpack.c.h.bf16 %v936_v55 }
 0x132   : > { %2049 = vmatprep.subr.bf16.mxu0 %v2241_v42  ;;  %2073 = vmatprep.subr.bf16.mxu1 %v2241_v42 }
 0x135   : > { %2051 = vmatpush3.bf16.msra.mxu0 %v2050_v57  ;;  %2075 = vmatpush3.bf16.msra.mxu1 %v2050_v57  ;;  %v929_v57 = vld [vmem:[%s2645_s4] sm:$0x1] }
 0x136   : > { %2052 = vmatprep.subr.bf16.mxu0 %v2241_v42  ;;  %2076 = vmatprep.subr.bf16.mxu1 %v2241_v42 }
 0x139   : > { %2054 = vmatpush3.bf16.msra.mxu0 %v2053_v60  ;;  %2078 = vmatpush3.bf16.msra.mxu1 %v2053_v60 }
 0x13a   : > { %2055 = vmatprep.subr.bf16.mxu0 %v2241_v42  ;;  %2079 = vmatprep.subr.bf16.mxu1 %v2241_v42 }
 0x13d   : > { %2057 = vmatpush3.bf16.msra.mxu0 %v2056_v61  ;;  %2081 = vmatpush3.bf16.msra.mxu1 %v2056_v61 }
 0x13e   : > { %2058 = vmatprep.subr.bf16.mxu0 %v2241_v42  ;;  %2082 = vmatprep.subr.bf16.mxu1 %v2241_v42 }
 0x141   : > { %2060 = vmatpush3.bf16.msra.mxu0 %v2059_v0  ;;  %2084 = vmatpush3.bf16.msra.mxu1 %v2059_v0 }
 0x142   : > { %1785 = vmatprep.subr.bf16.mxu0 %v2188_v3  ;;  %1947 = vmatprep.subr.bf16.mxu1 %v2189_v4 }
 0x144   : > { %1910 = vmatmul.mubr.f32.vlgmr.msra.gmra.mrb[0].mxu0 %v750_v1  ;;  %1945 = vmatmul.mubr.f32.vlgmr.msra.gmra.mrb[0].mxu1 %v843_v2 }
 0x145   : > { %1786 = vmatpush3.bf16.msra.mxu0 %v2190_v5  ;;  %1948 = vmatpush3.bf16.msra.mxu1 %v2189_v4 }
 0x146   : > { %1787 = vmatprep.subr.bf16.mxu0 %v2191_v6  ;;  %1949 = vmatprep.subr.bf16.mxu1 %v2192_v7 }
 0x149   : > { %1788 = vmatpush3.bf16.msra.mxu0 %v2193_v8  ;;  %1950 = vmatpush3.bf16.msra.mxu1 %v2192_v7 }
 0x14a   : > { %1789 = vmatprep.subr.bf16.mxu0 %v2194_v9  ;;  %1951 = vmatprep.subr.bf16.mxu1 %v2195_v10 }
 0x14d   : > { %1790 = vmatpush3.bf16.msra.mxu0 %v2196_v11  ;;  %1952 = vmatpush3.bf16.msra.mxu1 %v2195_v10 }
 0x14e   : > { %1791 = vmatprep.subr.bf16.mxu0 %v2197_v12  ;;  %1953 = vmatprep.subr.bf16.mxu1 %v2198_v13 }
 0x151   : > { %1792 = vmatpush3.bf16.msra.mxu0 %v2199_v14  ;;  %1954 = vmatpush3.bf16.msra.mxu1 %v2198_v13 }
 0x152   : > { %1793 = vmatprep.subr.bf16.mxu0 %v2200_v15  ;;  %1955 = vmatprep.subr.bf16.mxu1 %v2201_v16 }
 0x155   : > { %1794 = vmatpush3.bf16.msra.mxu0 %v2202_v17  ;;  %1956 = vmatpush3.bf16.msra.mxu1 %v2201_v16 }
 0x156   : > { %1795 = vmatprep.subr.bf16.mxu0 %v2203_v18  ;;  %1957 = vmatprep.subr.bf16.mxu1 %v2204_v19 }
 0x159   : > { %1796 = vmatpush3.bf16.msra.mxu0 %v2205_v20  ;;  %1958 = vmatpush3.bf16.msra.mxu1 %v2204_v19 }
 0x15a   : > { %1797 = vmatprep.subr.bf16.mxu0 %v2206_v21  ;;  %1959 = vmatprep.subr.bf16.mxu1 %v2207_v22 }
 0x15d   : > { %1798 = vmatpush3.bf16.msra.mxu0 %v2208_v23  ;;  %1960 = vmatpush3.bf16.msra.mxu1 %v2207_v22 }
 0x15e   : > { %1799 = vmatprep.subr.bf16.mxu0 %v2209_v24  ;;  %1961 = vmatprep.subr.bf16.mxu1 %v2210_v25 }
 0x161   : > { %1800 = vmatpush3.bf16.msra.mxu0 %v2211_v26  ;;  %1962 = vmatpush3.bf16.msra.mxu1 %v2210_v25 }
 0x217   : > { %v833_v27 = vpop.f32.mrb[0].mxu0  ;;  %v910_v28 = vpop.f32.mrb[0].mxu1 }
 0x218   : > { %v837_v29 = vrot.slane %v833_v27, 4  ;;  %v914_v30 = vrot.slane %v910_v28, 4  ;;  %v1911_v31 = vpop.f32.mrb[1].mxu0  ;;  %v1946_v32 = vpop.f32.mrb[1].mxu1 }
 0x21a   : > { %v838_v33 = vadd.f32 %v837_v29, %v833_v27  ;;  %v915_v34 = vadd.f32 %v914_v30, %v910_v28 }
 0x21c   : > { %v839_v35 = vrot.slane %v838_v33, 2  ;;  %v916_v36 = vrot.slane %v915_v34, 2 }
 0x21e   : > { %v840_v37 = vadd.f32 %v839_v35, %v838_v33  ;;  %v917_v38 = vadd.f32 %v916_v36, %v915_v34 }
 0x220   : > { %v841_v39 = vrot.slane %v840_v37, 1  ;;  %v918_v40 = vrot.slane %v917_v38, 1 }
 0x222   : > { %v842_v41 = vadd.f32 %v841_v39, %v840_v37  ;;  %v919_v42 = vadd.f32 %v918_v40, %v917_v38 }
 0x224   : > { %v920_v43 = vmul.f32 0.001953125, %v842_v41  ;;  %v921_v45 = vmul.f32 0.001953125, %v919_v42 }
 0x226   : > { %v922_v44 = vmul.f32 %v920_v43, %v920_v43 }
 0x228   : > { %v923_v46 = vsub.f32 %v921_v45, %v922_v44 }
 0x22a   : > { %v924_v47 = vmax.f32 %v923_v46, 0.0 }
 0x22c   : > { %v926_v48 = vadd.f32 1e-05, %v924_v47 }
 0x22e   : > { %2212 = vrsqrt.f32 %v926_v48 }
 0x238   : > { %v2213_v54 = vpop.eup %2212 }
 0x239   : > { %v928_v56 = vmul.f32 %v2213_v54, %v925_v51 }
 0x23b   : > { %v930_v60 = vmul.f32 %v928_v56, %v920_v43  ;;  %v945_v61 = vrot.slane %v928_v56, %v944_v52 }
 0x23d   : > { %v931_v0 = vsub.f32 %v929_v57, %v930_v60  ;;  %v947_v1 = vmul.f32 %v945_v61, %v937_v58  ;;  %v948_v2 = vmul.f32 %v945_v61, %v938_v59  ;;  %v949_v4 = vmul.f32 %v945_v61, %v939_v62 }
 0x23e   : > { %v950_v5 = vmul.f32 %v945_v61, %v940_v63 }
 0x23f   : > { %v955_v3 = vrot.slane %v931_v0, %v944_v52 }
 0x241   : > { %v957_v6 = vadd.f32 %v955_v3, %v947_v1  ;;  %v958_v7 = vadd.f32 %v955_v3, %v948_v2  ;;  %v959_v8 = vadd.f32 %v955_v3, %v949_v4  ;;  %v960_v9 = vadd.f32 %v955_v3, %v950_v5 }
 0x243   : > { %v961_v10 = vmax.f32 %v957_v6, 0.0  ;;  %v962_v11 = vmax.f32 %v958_v7, 0.0  ;;  %v963_v12 = vmax.f32 %v959_v8, 0.0  ;;  %v964_v13 = vmax.f32 %v960_v9, 0.0 }
 0x245   : > { %v970_v14 = vrot.slane %v961_v10, 7  ;;  %v971_v15 = vrot.slane %v962_v11, 7  ;;  %v982_v16 = vrot.slane %v962_v11, 6  ;;  %v973_v17 = vrot.slane %v963_v12, 7 }
 0x246   : > { %v974_v18 = vrot.slane %v964_v13, 7  ;;  %v983_v19 = vrot.slane %v964_v13, 6 }
 0x247   : > { %v972_v20 = vsel %vm969_vm4, %v970_v14, %v971_v15  ;;  %v986_v21 = vsel %vm969_vm4, %v961_v10, %v970_v14  ;;  %v988_v22 = vsel %vm969_vm4, %v971_v15, %v982_v16  ;;  %v987_v23 = vsel %vm969_vm4, %v963_v12, %v973_v17  ;;  %v1324_v15 = vld [vmem:[#allocation5] sm:$0xff] }
 0x248   : > { %v995_v24 = vrot.slane %v986_v21, 1  ;;  %v996_v25 = vrot.slane %v972_v20, 1  ;;  %v998_v26 = vrot.slane %v988_v22, 1  ;;  %v1010_v27 = vrot.slane %v986_v21, 2 }
 0x249   : > { %v1011_v28 = vrot.slane %v972_v20, 2  ;;  %v1013_v29 = vrot.slane %v988_v22, 2  ;;  %v1024_v30 = vpack.c.bf16 %v972_v20, %v986_v21  ;;  %v975_v31 = vsel %vm969_vm4, %v973_v17, %v974_v18  ;;  %v1330_v20 = vld [vmem:[#allocation6] sm:$0xff] }
 0x24a   : > { %v997_v32 = vsel %vm994_vm5, %v995_v24, %v996_v25  ;;  %v999_v33 = vsel %vm994_vm5, %v996_v25, %v998_v26  ;;  %v989_v34 = vsel %vm969_vm4, %v974_v18, %v983_v19  ;;  %v1015_v35 = vrot.slane %v987_v23, 2 }
 0x24b   : > { %v1025_v36 = vpack.c.bf16 %v999_v33, %v997_v32  ;;  %v1012_v37 = vsel %vm1009_vm6, %v1010_v27, %v1011_v28  ;;  %v1014_v38 = vsel %vm1009_vm6, %v1011_v28, %v1013_v29  ;;  %v1016_v39 = vrot.slane %v975_v31, 2 }
 0x24c   : > { %v1026_v40 = vpack.c.bf16 %v1014_v38, %v1012_v37  ;;  %v1018_v41 = vrot.slane %v989_v34, 2  ;;  %v1000_v42 = vrot.slane %v987_v23, 1  ;;  %v1001_v43 = vrot.slane %v975_v31, 1 }
 0x24d   : > { %1254 = vmatprep.mubr.bf16.mxu0 %v1025_v36  ;;  %v1017_v44 = vsel %vm1009_vm6, %v1015_v35, %v1016_v39  ;;  %v1003_v45 = vrot.slane %v989_v34, 1  ;;  %v1027_v46 = vpack.c.bf16 %v975_v31, %v987_v23 }
 0x24e   : > { %1963 = vmatprep.mubr.bf16.mxu1 %v1026_v40  ;;  %1255 = vmatmul.mubr.bf16.vlgmr.msra.gmra.mrb[4].mxu0 %v1024_v30  ;;  %v1019_v47 = vsel %vm1009_vm6, %v1016_v39, %v1018_v41  ;;  %v1002_v48 = vsel %vm994_vm5, %v1000_v42, %v1001_v43 }
 0x24f   : > { %v1029_v49 = vpack.c.bf16 %v1019_v47, %v1017_v44  ;;  %v1004_v50 = vsel %vm994_vm5, %v1001_v43, %v1003_v45 }
 0x250   : > { %v1028_v51 = vpack.c.bf16 %v1004_v50, %v1002_v48 }
 0x251   : > { %1964 = vmatmul.mubr.bf16.vlgmr.msra.gmra.mrb[4].mxu1 %v1029_v49 }
 0x252   : > { %1262 = vmatprep.mubr.bf16.mxu0 %v1028_v51 }
 0x256   : > { %1263 = vmatmul.mubr.bf16.gmra.mrb[8].mxu0 %v1027_v46 }
 0x321   : > { %v1801_v52 = vpop.f32.mrb[4].mxu0 }
 0x322   : > { %v1802_v53 = vpop.f32.mrb[5].mxu0 }
 0x323   : > { %v1803_v54 = vadd.f32 %v1802_v53, %v1801_v52  ;;  %v1804_v55 = vpop.f32.mrb[6].mxu0 }
 0x324   : > { %v1965_v56 = vpop.f32.mrb[4].mxu1  ;;  %v1805_v57 = vpop.f32.mrb[7].mxu0 }
 0x325   : > { %v1305_v58 = vpop.f32.mrb[5].mxu1  ;;  %v1806_v59 = vadd.f32 %v1805_v57, %v1804_v55 }
 0x326   : > { %v1306_v60 = vadd.f32 %v1803_v54, %v1305_v58  ;;  %v1966_v61 = vpop.f32.mrb[6].mxu1 }
 0x327   : > { %v1308_v62 = vpop.f32.mrb[7].mxu1 }
 0x328   : > { %v1309_v63 = vadd.f32 %v1806_v59, %v1308_v62  ;;  %v1331_v1 = vmul.f32 %v1306_v60, %v1306_v60 }
 0x329   : > { %v1807_v0 = vpop.f32.mrb[8].mxu0 }
 0x32a   : > { %v1320_v2 = vpack.c.bf16 %v1309_v63, %v1306_v60  ;;  %v1325_v3 = vadd.f32 %v1309_v63, %v1306_v60  ;;  %v1332_v4 = vmul.f32 %v1309_v63, %v1309_v63  ;;  %v1808_v5 = vpop.f32.mrb[9].mxu0 }
 0x32b   : > { %v1809_v6 = vadd.f32 %v1808_v5, %v1807_v0  ;;  %v1810_v7 = vpop.f32.mrb[10].mxu0 }
 0x32c   : > { %1322 = vst [vmem:[#allocation2] sm:$0xff] %v1320_v2  ;;  %v1335_v8 = vadd.f32 %v1332_v4, %v1331_v1  ;;  %v1811_v9 = vpop.f32.mrb[11].mxu0 }
 0x32d   : > { %v1314_v10 = vadd.f32 %v1965_v56, %v1809_v6  ;;  %v1812_v11 = vadd.f32 %v1811_v9, %v1810_v7 }
 0x32f   : > { %v1326_v12 = vadd.f32 %v1325_v3, %v1314_v10  ;;  %v1333_v13 = vmul.f32 %v1314_v10, %v1314_v10  ;;  %v1317_v14 = vadd.f32 %v1966_v61, %v1812_v11 }
 0x331   : > { %v1336_v16 = vadd.f32 %v1335_v8, %v1333_v13  ;;  %v1321_v17 = vpack.c.bf16 %v1317_v14, %v1314_v10  ;;  %v1327_v18 = vadd.f32 %v1326_v12, %v1317_v14  ;;  %v1334_v19 = vmul.f32 %v1317_v14, %v1317_v14 }
 0x333   : > { %1323 = vst [vmem:[#allocation2 + $0x8] sm:$0xff] %v1321_v17  ;;  %v1328_v21 = vadd.f32 %v1327_v18, %v1324_v15  ;;  %v1337_v22 = vadd.f32 %v1336_v16, %v1334_v19 }
 0x335   : > { %1329 = vst [vmem:[#allocation5] sm:$0xff] %v1328_v21  ;;  %v1338_v23 = vadd.f32 %v1337_v22, %v1330_v20 }
 0x337   : > { %1339 = vst [vmem:[#allocation6] sm:$0xff] %v1338_v23 }
 0x338 PF: > { %p1707_p7 = scmp.ne.s32.totalorder %s2230_s27, 2 }
 0x339   : > { %v1345_v24 = vld [vmem:[%s2648_s7] sm:$0xff] (!%p1707_p7)  ;;  %v1346_v25 = vld [vmem:[%s2648_s7 + $0x8] sm:$0xff] (!%p1707_p7)  ;;  %v1347_v26 = vld [vmem:[%s2648_s7 + $0x10] sm:$0xff] (!%p1707_p7)  ;;  %v2244_v27 = vmov (!%p1707_p7), 0.0|0.0   ;;  %vm2245_vm7 = vmmov (!%p1707_p7), 0   ;;  %v2246_v30 = vmov (!%p1707_p7), 0.0   ;;  %v1540_v10 = vlaneseq (!%p1707_p7) }
 0x33a   : > { %1343 = sbr.rel (%p1707_p7) target bundleno = 1120 (0x460), region = 68  ;;  %2085 = vmatprep.subr.bf16.mxu0 (!%p1707_p7), %v2244_v27  ;;  %2109 = vmatprep.subr.bf16.mxu1 (!%p1707_p7), %v2244_v27  ;;  %v2086_v28 = vpack.c.bf16 (!%p1707_p7), %v1346_v25, %v1345_v24  ;;  %v1348_v29 = vld [vmem:[%s2648_s7 + $0x18] sm:$0xff] (!%p1707_p7)  ;;  %v1349_v32 = vld [vmem:[%s2648_s7 + $0x20] sm:$0xff] (!%p1707_p7)  ;;  %v1350_v33 = vld [vmem:[%s2648_s7 + $0x28] sm:$0xff] (!%p1707_p7) }
 0x33b   : > { %1999 = vmatprep.mubr.msk.f32.mxu0 (!%p1707_p7), %vm2245_vm7, %v2246_v30  ;;  %2034 = vmatprep.mubr.msk.f32.mxu1 (!%p1707_p7), %vm2245_vm7, %v2246_v30  ;;  %v2089_v31 = vpack.c.bf16 (!%p1707_p7), %v1348_v29, %v1347_v26  ;;  %v2092_v34 = vpack.c.bf16 (!%p1707_p7), %v1350_v33, %v1349_v32  ;;  %v1351_v35 = vld [vmem:[%s2648_s7 + $0x30] sm:$0xff] (!%p1707_p7)  ;;  %v1352_v36 = vld [vmem:[%s2648_s7 + $0x38] sm:$0xff] (!%p1707_p7)  ;;  %v1353_v38 = vld [vmem:[%s2648_s7 + $0x40] sm:$0xff] (!%p1707_p7)  ;;  %v1541_v11 = vshrl.u32 (!%p1707_p7), %v1540_v10, 7 }
 0x33c   : > { %2087 = vmatpush3.bf16.msra.mxu0 (!%p1707_p7), %v2086_v28  ;;  %2111 = vmatpush3.bf16.msra.mxu1 (!%p1707_p7), %v2086_v28  ;;  %v2095_v37 = vpack.c.bf16 (!%p1707_p7), %v1352_v36, %v1351_v35  ;;  %v1354_v39 = vld [vmem:[%s2648_s7 + $0x48] sm:$0xff] (!%p1707_p7)  ;;  %v1355_v41 = vld [vmem:[%s2648_s7 + $0x50] sm:$0xff] (!%p1707_p7)  ;;  %v1356_v42 = vld [vmem:[%s2648_s7 + $0x58] sm:$0xff] (!%p1707_p7) }
 0x33d   : > { %2088 = vmatprep.subr.bf16.mxu0 (!%p1707_p7), %v2244_v27  ;;  %2112 = vmatprep.subr.bf16.mxu1 (!%p1707_p7), %v2244_v27  ;;  %v2098_v40 = vpack.c.bf16 (!%p1707_p7), %v1354_v39, %v1353_v38  ;;  %v2101_v43 = vpack.c.bf16 (!%p1707_p7), %v1356_v42, %v1355_v41  ;;  %v1357_v44 = vld [vmem:[%s2648_s7 + $0x60] sm:$0xff] (!%p1707_p7)  ;;  %v1358_v45 = vld [vmem:[%s2648_s7 + $0x68] sm:$0xff] (!%p1707_p7)  ;;  %v1359_v47 = vld [vmem:[%s2648_s7 + $0x70] sm:$0xff] (!%p1707_p7)  ;;  %v1542_v14 = vsub.s32 (!%p1707_p7), 0, %v1541_v11 }
 0x33e   : > { %v2104_v46 = vpack.c.bf16 (!%p1707_p7), %v1358_v45, %v1357_v44  ;;  %v1360_v48 = vld [vmem:[%s2648_s7 + $0x78] sm:$0xff] (!%p1707_p7)  ;;  %v1344_v50 = vld [vmem:[#allocation5] sm:$0xff] (!%p1707_p7)  ;;  %v1437_v51 = vld [vmem:[#allocation6] sm:$0xff] (!%p1707_p7) }
 0x33f   : > { %v2107_v49 = vpack.c.bf16 (!%p1707_p7), %v1360_v48, %v1359_v47  ;;  %v1519_v12 = vld [vmem:[%s2646_s5] sm:$0x1] (!%p1707_p7)  ;;  %v1534_v16 = vld [vmem:[#allocation2 + $0x8] sm:$0xff] (!%p1707_p7)  ;;  %v1528_v33 = vld [vmem:[%s2641_s0 + $0x10] sm:$0xff] (!%p1707_p7) }
 0x340   : > { %2090 = vmatpush3.bf16.msra.mxu0 (!%p1707_p7), %v2089_v31  ;;  %2114 = vmatpush3.bf16.msra.mxu1 (!%p1707_p7), %v2089_v31  ;;  %v1533_v13 = vld [vmem:[#allocation2] sm:$0xff] (!%p1707_p7)  ;;  %v1537_v22 = vunpack.c.l.bf16 (!%p1707_p7), %v1534_v16  ;;  %v1538_v23 = vunpack.c.h.bf16 (!%p1707_p7), %v1534_v16  ;;  %v1527_v32 = vld [vmem:[%s2641_s0 + $0x8] sm:$0xff] (!%p1707_p7) }
 0x341   : > { %2091 = vmatprep.subr.bf16.mxu0 %v2244_v27  ;;  %2115 = vmatprep.subr.bf16.mxu1 %v2244_v27  ;;  %v1523_v18 = vld [vmem:[%s2647_s6] sm:$0x1]  ;;  %v1535_v19 = vunpack.c.l.bf16 %v1533_v13  ;;  %v1536_v20 = vunpack.c.h.bf16 %v1533_v13 }
 0x344   : > { %2093 = vmatpush3.bf16.msra.mxu0 %v2092_v34  ;;  %2117 = vmatpush3.bf16.msra.mxu1 %v2092_v34  ;;  %v1529_v34 = vld [vmem:[%s2641_s0 + $0x18] sm:$0xff] }
 0x345   : > { %2094 = vmatprep.subr.bf16.mxu0 %v2244_v27  ;;  %2118 = vmatprep.subr.bf16.mxu1 %v2244_v27 }
 0x348   : > { %2096 = vmatpush3.bf16.msra.mxu0 %v2095_v37  ;;  %2120 = vmatpush3.bf16.msra.mxu1 %v2095_v37 }
 0x349   : > { %2097 = vmatprep.subr.bf16.mxu0 %v2244_v27  ;;  %2121 = vmatprep.subr.bf16.mxu1 %v2244_v27 }
 0x34c   : > { %2099 = vmatpush3.bf16.msra.mxu0 %v2098_v40  ;;  %2123 = vmatpush3.bf16.msra.mxu1 %v2098_v40 }
 0x34d   : > { %2100 = vmatprep.subr.bf16.mxu0 %v2244_v27  ;;  %2124 = vmatprep.subr.bf16.mxu1 %v2244_v27 }
 0x350   : > { %2102 = vmatpush3.bf16.msra.mxu0 %v2101_v43  ;;  %2126 = vmatpush3.bf16.msra.mxu1 %v2101_v43 }
 0x351   : > { %2103 = vmatprep.subr.bf16.mxu0 %v2244_v27  ;;  %2127 = vmatprep.subr.bf16.mxu1 %v2244_v27 }
 0x354   : > { %2105 = vmatpush3.bf16.msra.mxu0 %v2104_v46  ;;  %2129 = vmatpush3.bf16.msra.mxu1 %v2104_v46 }
 0x355   : > { %2106 = vmatprep.subr.bf16.mxu0 %v2244_v27  ;;  %2130 = vmatprep.subr.bf16.mxu1 %v2244_v27  ;;  %v1526_v27 = vld [vmem:[%s2641_s0] sm:$0xff] }
 0x358   : > { %2108 = vmatpush3.bf16.msra.mxu0 %v2107_v49  ;;  %2132 = vmatpush3.bf16.msra.mxu1 %v2107_v49 }
 0x35b   : > { %2000 = vmatmul.mubr.f32.vlgmr.msra.gmra.mrb[0].mxu0 %v1344_v50  ;;  %2035 = vmatmul.mubr.f32.vlgmr.msra.gmra.mrb[0].mxu1 %v1437_v51 }
 0x42e   : > { %v1427_v52 = vpop.f32.mrb[0].mxu0  ;;  %v1504_v53 = vpop.f32.mrb[0].mxu1 }
 0x42f   : > { %v1431_v54 = vrot.slane %v1427_v52, 4  ;;  %v1508_v55 = vrot.slane %v1504_v53, 4  ;;  %v2001_v56 = vpop.f32.mrb[1].mxu0  ;;  %v2036_v57 = vpop.f32.mrb[1].mxu1 }
 0x431   : > { %v1432_v58 = vadd.f32 %v1431_v54, %v1427_v52  ;;  %v1509_v59 = vadd.f32 %v1508_v55, %v1504_v53 }
 0x433   : > { %v1433_v60 = vrot.slane %v1432_v58, 2  ;;  %v1510_v61 = vrot.slane %v1509_v59, 2 }
 0x435   : > { %v1434_v62 = vadd.f32 %v1433_v60, %v1432_v58  ;;  %v1511_v63 = vadd.f32 %v1510_v61, %v1509_v59 }
 0x437   : > { %v1435_v0 = vrot.slane %v1434_v62, 1  ;;  %v1512_v1 = vrot.slane %v1511_v63, 1 }
 0x439   : > { %v1436_v2 = vadd.f32 %v1435_v0, %v1434_v62  ;;  %v1513_v3 = vadd.f32 %v1512_v1, %v1511_v63 }
 0x43b   : > { %v1514_v4 = vmul.f32 0.001953125, %v1436_v2  ;;  %v1515_v6 = vmul.f32 0.001953125, %v1513_v3 }
 0x43d   : > { %v1516_v5 = vmul.f32 %v1514_v4, %v1514_v4 }
 0x43f   : > { %v1517_v7 = vsub.f32 %v1515_v6, %v1516_v5 }
 0x441   : > { %v1518_v8 = vmax.f32 %v1517_v7, 0.0 }
 0x443   : > { %v1520_v9 = vadd.f32 1e-05, %v1518_v8 }
 0x445   : > { %2214 = vrsqrt.f32 %v1520_v9 }
 0x44f   : > { %v2215_v15 = vpop.eup %2214 }
 0x450   : > { %v1522_v17 = vmul.f32 %v2215_v15, %v1519_v12 }
 0x452   : > { %v1524_v21 = vmul.f32 %v1522_v17, %v1514_v4  ;;  %v1543_v24 = vrot.slane %v1522_v17, %v1542_v14 }
 0x454   : > { %v1525_v25 = vsub.f32 %v1523_v18, %v1524_v21  ;;  %v1545_v26 = vmul.f32 %v1543_v24, %v1535_v19  ;;  %v1546_v28 = vmul.f32 %v1543_v24, %v1536_v20  ;;  %v1547_v29 = vmul.f32 %v1543_v24, %v1537_v22 }
 0x455   : > { %v1548_v30 = vmul.f32 %v1543_v24, %v1538_v23 }
 0x456   : > { %v1553_v31 = vrot.slane %v1525_v25, %v1542_v14 }
 0x458   : > { %v1555_v35 = vadd.f32 %v1553_v31, %v1545_v26  ;;  %v1556_v36 = vadd.f32 %v1553_v31, %v1546_v28  ;;  %v1557_v37 = vadd.f32 %v1553_v31, %v1547_v29  ;;  %v1558_v38 = vadd.f32 %v1553_v31, %v1548_v30 }
 0x45a   : > { %v1559_v39 = vadd.f32 %v1555_v35, %v1526_v27  ;;  %v1560_v40 = vadd.f32 %v1556_v36, %v1527_v32  ;;  %v1561_v41 = vadd.f32 %v1557_v37, %v1528_v33  ;;  %v1562_v42 = vadd.f32 %v1558_v38, %v1529_v34 }
 0x45c   : > { %v1563_v43 = vmax.f32 %v1559_v39, 0.0  ;;  %v1564_v44 = vmax.f32 %v1560_v40, 0.0  ;;  %v1565_v45 = vmax.f32 %v1561_v41, 0.0  ;;  %v1566_v46 = vmax.f32 %v1562_v42, 0.0 }
 0x45e   : > { %1567 = vst [vmem:[%s2649_s8] sm:$0xff] %v1563_v43  ;;  %1568 = vst [vmem:[%s2649_s8 + $0x8] sm:$0xff] %v1564_v44 }
 0x45f   : > { %1569 = vst [vmem:[%s2649_s8 + $0x10] sm:$0xff] %v1565_v45  ;;  %1570 = vst [vmem:[%s2649_s8 + $0x18] sm:$0xff] %v1566_v46 }
 0x460 PF: > { %s18_s29 = sadd.s32 1, %s2238_s29   ;;  %s2650_s27 = smov %s2234_s28 }
 0x461   : > { %p15_p8 = scmp.ge.s32.totalorder %s18_s29, 5   ;;  %s2651_s28 = smov %s2653_s30 }
 0x463   :  { %17 = sbr.rel (!%p15_p8) target bundleno = 2 (0x2), region = 101 }

</bundles_post_ra>
